<compile_context>
chip_gen: v6e
topology: v6e:2x2x1
jax: 0.10.0
libtpu: 0.0.40
codegen_flags: <defaults>
</compile_context>

<pallas_src>
import functools

import jax
import jax.numpy as jnp
from jax.experimental import pallas as pl
from jax.experimental.pallas import tpu as pltpu


def _round_up(x: int, m: int) -> int:
    return (x + m - 1) // m * m


def _make_kernel(num_levels: int):
    def kernel(flat_ref, pos_ref, lvl_ref, wt_ref, scores_ref):
        # flat_ref:   (TB, N)   f32 pixel values in [0, 1]
        # pos_ref:    (N, D)    bf16 position hypervectors (+-1, exact)
        # lvl_ref:    (L, D)    f32 level hypervectors (+-1)
        # wt_ref:     (D, CP)   bf16 prepped centroid weights, pre-transposed
        # scores_ref: (TB, CP)  f32
        flat = flat_ref[...]                                        # (TB, N)

        # torchhd Level value_to_index on [low=0, high=1], fused in-kernel.
        idx = jnp.clip(jnp.round(flat * (num_levels - 1)),
                       0, num_levels - 1).astype(jnp.int32)         # (TB, N)

        pos = pos_ref[...]                                          # (N, D) bf16

        # bind + multiset, decomposed per level:
        #   acc[b, d] = sum_l lvl[l, d] * sum_n (idx[b,n]==l) * pos[n, d]
        # Each matmul is {0,1} x {+-1} in bf16 with f32 accumulate -> exact.
        acc = None
        for l in range(num_levels):
            mask = (idx == l).astype(jnp.bfloat16)                  # (TB, N)
            partial = jnp.dot(mask, pos,
                              preferred_element_type=jnp.float32)   # (TB, D)
            term = partial * lvl_ref[l:l + 1, :]                    # scale by +-1 row
            acc = term if acc is None else acc + term

        # torchhd.hard_quantize: > 0 -> +1 else -1 (exact in bf16)
        q = jnp.where(acc > 0, 1.0, -1.0).astype(jnp.bfloat16)      # (TB, D)

        # Classify: wt_ref already carries 1/||w|| and 1/sqrt(D) (cosine path)
        # and is pre-transposed, so this feeds the MXU with zero relayout.
        scores_ref[...] = jnp.dot(q, wt_ref[...],
                                  preferred_element_type=jnp.float32)  # (TB, CP)

    return kernel


def hd_model_forward(x, pos_w, lvl_w, centroid_w, *, levels: int,
                     dot: bool = False, batch_tile: int = 128,
                     eps: float = 1e-12):
    """Full Model.forward: encode (bind/multiset/hard_quantize) + Centroid classify."""
    B = x.shape[0]
    flat = x.reshape(B, -1).astype(jnp.float32)                     # torch.nn.Flatten
    N, D = pos_w.shape
    C = centroid_w.shape[0]
    L = levels

    # Batch tiling: big tiles for MXU row utilization, but don't over-pad small
    # batches; keep >= 2 grid steps when possible (v7x megacore sharding).
    TB = min(_round_up(max(B, 1), 8), batch_tile)
    BP = _round_up(max(B, 1), TB)
    if BP // TB < 2 and TB > 8:
        TB = max(8, _round_up((TB + 1) // 2, 8))
        BP = _round_up(max(B, 1), TB)
    CP = _round_up(max(C, 1), 128)           # lane-dense output (no masked vst)

    # Pad batch with zero rows (computed then sliced away).
    flat_p = jnp.zeros((BP, N), jnp.float32).at[:B].set(flat)

    pos_bf16 = pos_w.astype(jnp.bfloat16)    # +-1 -> exact in bf16
    lvl_f32 = lvl_w.astype(jnp.float32)      # (L, D) +-1

    w = centroid_w.astype(jnp.float32)
    if dot:
        w_prep = w
    else:
        # cosine: ||q|| = sqrt(D) is constant (q in {+-1}) -> fold here;
        # pre-normalize centroid rows with eps (guards zero / untrained rows).
        wn = jnp.sqrt(jnp.sum(w * w, axis=-1, keepdims=True))
        w_prep = w / (jnp.maximum(wn, eps) * jnp.sqrt(jnp.float32(D)))
    # Pre-transpose to (D, CP) and cast to bf16 (q is exact; w loses ~2^-9
    # relative precision, which cannot change the argmax).
    wt_pad = jnp.zeros((D, CP), jnp.float32).at[:, :C].set(w_prep.T)
    wt_pad = wt_pad.astype(jnp.bfloat16)

    scores_full = pl.pallas_call(
        _make_kernel(L),
        out_shape=jax.ShapeDtypeStruct((BP, CP), jnp.float32),
        grid=(BP // TB,),
        in_specs=[
            pl.BlockSpec((TB, N), lambda i: (i, 0)),        # flattened images
            pl.BlockSpec((N, D), lambda i: (0, 0),
                         pipeline_mode=pl.Buffered(1)),     # position table (invariant)
            pl.BlockSpec((L, D), lambda i: (0, 0),
                         pipeline_mode=pl.Buffered(1)),     # level table (invariant)
            pl.BlockSpec((D, CP), lambda i: (0, 0),
                         pipeline_mode=pl.Buffered(1)),     # prepped centroids^T
        ],
        out_specs=pl.BlockSpec((TB, CP), lambda i: (i, 0)),
        compiler_params=pltpu.CompilerParams(
            dimension_semantics=("parallel",),
            vmem_limit_bytes=32 * 1024 * 1024),
    )(flat_p, pos_bf16, lvl_f32, wt_pad)

    return scores_full[:B, :C]


if __name__ == "__main__":
    # Small shapes consistent with the module: MNIST-like 1-channel images.
    B, SIZE, LEVELS, DIM, NUM_CLASSES = 2, 16, 16, 256, 10
    N = SIZE * SIZE

    key = jax.random.PRNGKey(0)
    kx, kp, kl, kc = jax.random.split(key, 4)

    # Input images (B, 1, H, W) with pixel values in [0, 1] like ToTensor().
    x = jax.random.uniform(kx, (B, 1, SIZE, SIZE), dtype=jnp.float32)

    # embeddings.Random(size*size, dimensions): random bipolar {-1, +1} hypervectors.
    pos_w = jnp.where(jax.random.bernoulli(kp, 0.5, (N, DIM)),
                      1.0, -1.0).astype(jnp.float32)

    # embeddings.Level(levels, dimensions): interpolated level hypervectors —
    # flip a growing prefix of a random bipolar base hypervector.
    base = jnp.where(jax.random.bernoulli(kl, 0.5, (DIM,)), 1.0, -1.0).astype(jnp.float32)
    flip_counts = jnp.round(jnp.arange(LEVELS) / (LEVELS - 1) * DIM).astype(jnp.int32)
    lane = jnp.arange(DIM)[None, :]
    lvl_w = jnp.where(lane < flip_counts[:, None],
                      -base[None, :], base[None, :]).astype(jnp.float32)

    # Centroid(dimensions, num_classes): torchhd zero-inits and trains via .add();
    # use random values so cosine similarity is well defined.
    centroid_w = jax.random.normal(kc, (NUM_CLASSES, DIM), dtype=jnp.float32)

    fwd = jax.jit(functools.partial(hd_model_forward, levels=LEVELS, dot=False))
    scores = fwd(x, pos_w, lvl_w, centroid_w)
    jax.block_until_ready(scores)
    assert scores.shape == (B, NUM_CLASSES) and scores.dtype == jnp.float32

    # Pure-JAX f32 reference for correctness.
    flat_ref = x.reshape(B, -1)
    idx_ref = jnp.clip(jnp.round(flat_ref * (LEVELS - 1)), 0, LEVELS - 1).astype(jnp.int32)
    s_ref = (pos_w[None] * lvl_w[idx_ref]).sum(axis=1)
    q_ref = jnp.where(s_ref > 0, 1.0, -1.0)
    qn = q_ref / jnp.sqrt(jnp.sum(q_ref * q_ref, -1, keepdims=True))
    wn = centroid_w / jnp.maximum(
        jnp.sqrt(jnp.sum(centroid_w * centroid_w, -1, keepdims=True)), 1e-12)
    ref = qn @ wn.T
    # Bind path is exact; only the bf16 centroid cast perturbs scores (~2e-3 abs).
    assert jnp.allclose(scores, ref, atol=1e-2, rtol=1e-2)

    print("KERNEL_OK")
</pallas_src>

<mosaic_0001>
module attributes {stable_mosaic.version = 11 : i64} {
  func.func @kernel(%arg0: i32, %arg1: memref<8x256xf32, #tpu.memory_space<vmem>>, %arg2: memref<256x256xbf16, #tpu.memory_space<vmem>>, %arg3: memref<16x256xf32, #tpu.memory_space<vmem>>, %arg4: memref<256x128xbf16, #tpu.memory_space<vmem>>, %arg5: memref<8x128xf32, #tpu.memory_space<vmem>>) attributes {dimension_semantics = [#tpu.dimension_semantics<parallel>], iteration_bounds = array<i64: 1>, scalar_prefetch = 0 : i64, scratch_operands = 0 : i64, tpu.core_type = #tpu.core_type<tc>, window_params = [{transform_indices = @transform_0, window_bounds = array<i64: 8, 256>}, {pipeline_mode = #tpu.pipeline_mode<synchronous>, transform_indices = @transform_1, window_bounds = array<i64: 256, 256>}, {pipeline_mode = #tpu.pipeline_mode<synchronous>, transform_indices = @transform_2, window_bounds = array<i64: 16, 256>}, {pipeline_mode = #tpu.pipeline_mode<synchronous>, transform_indices = @transform_3, window_bounds = array<i64: 256, 128>}, {transform_indices = @transform_4, window_bounds = array<i64: 8, 128>}]} {
    %c0 = arith.constant 0 : index
    %c0_0 = arith.constant 0 : index
    %0 = vector.load %arg1[%c0, %c0_0] : memref<8x256xf32, #tpu.memory_space<vmem>>, vector<8x256xf32>
    %cst = arith.constant 1.500000e+01 : f32
    %1 = vector.broadcast %cst : f32 to vector<8x256xf32>
    %2 = arith.mulf %0, %1 : vector<8x256xf32>
    %3 = math.roundeven %2 : vector<8x256xf32>
    %c0_i32 = arith.constant 0 : i32
    %c15_i32 = arith.constant 15 : i32
    %4 = arith.sitofp %c0_i32 : i32 to f32
    %5 = vector.broadcast %4 : f32 to vector<8x256xf32>
    %6 = arith.maximumf %5, %3 : vector<8x256xf32>
    %7 = arith.sitofp %c15_i32 : i32 to f32
    %8 = vector.broadcast %7 : f32 to vector<8x256xf32>
    %9 = arith.minimumf %8, %6 : vector<8x256xf32>
    %10 = arith.fptosi %9 : vector<8x256xf32> to vector<8x256xi32>
    %c0_1 = arith.constant 0 : index
    %c0_2 = arith.constant 0 : index
    %11 = vector.load %arg2[%c0_1, %c0_2] : memref<256x256xbf16, #tpu.memory_space<vmem>>, vector<256x256xbf16>
    %c0_i32_3 = arith.constant 0 : i32
    %12 = vector.broadcast %c0_i32_3 : i32 to vector<8x256xi32>
    %13 = arith.cmpi eq, %10, %12 : vector<8x256xi32>
    %14 = arith.extui %13 : vector<8x256xi1> to vector<8x256xi32>
    %15 = arith.sitofp %14 : vector<8x256xi32> to vector<8x256xf32>
    %16 = arith.truncf %15 : vector<8x256xf32> to vector<8x256xbf16>
    %cst_4 = arith.constant dense<0.000000e+00> : vector<8x256xf32>
    %17 = tpu.matmul %16, %11, %cst_4 {dimension_numbers = #tpu.dot_dimension_numbers<[1], [0], [0], [1], [0, 0, 1, 1], [], []>} : vector<8x256xbf16>, vector<256x256xbf16>, vector<8x256xf32> -> vector<8x256xf32>
    %c0_5 = arith.constant 0 : index
    %c0_6 = arith.constant 0 : index
    %18 = vector.load %arg3[%c0_5, %c0_6] : memref<16x256xf32, #tpu.memory_space<vmem>>, vector<1x256xf32>
    %19 = vector.broadcast %18 : vector<1x256xf32> to vector<8x256xf32>
    %20 = arith.mulf %17, %19 : vector<8x256xf32>
    %c1_i32 = arith.constant 1 : i32
    %21 = vector.broadcast %c1_i32 : i32 to vector<8x256xi32>
    %22 = arith.cmpi eq, %10, %21 : vector<8x256xi32>
    %23 = arith.extui %22 : vector<8x256xi1> to vector<8x256xi32>
    %24 = arith.sitofp %23 : vector<8x256xi32> to vector<8x256xf32>
    %25 = arith.truncf %24 : vector<8x256xf32> to vector<8x256xbf16>
    %cst_7 = arith.constant dense<0.000000e+00> : vector<8x256xf32>
    %26 = tpu.matmul %25, %11, %cst_7 {dimension_numbers = #tpu.dot_dimension_numbers<[1], [0], [0], [1], [0, 0, 1, 1], [], []>} : vector<8x256xbf16>, vector<256x256xbf16>, vector<8x256xf32> -> vector<8x256xf32>
    %c1 = arith.constant 1 : index
    %c0_8 = arith.constant 0 : index
    %27 = vector.load %arg3[%c1, %c0_8] : memref<16x256xf32, #tpu.memory_space<vmem>>, vector<1x256xf32>
    %28 = vector.broadcast %27 : vector<1x256xf32> to vector<8x256xf32>
    %29 = arith.mulf %26, %28 : vector<8x256xf32>
    %30 = arith.addf %20, %29 : vector<8x256xf32>
    %c2_i32 = arith.constant 2 : i32
    %31 = vector.broadcast %c2_i32 : i32 to vector<8x256xi32>
    %32 = arith.cmpi eq, %10, %31 : vector<8x256xi32>
    %33 = arith.extui %32 : vector<8x256xi1> to vector<8x256xi32>
    %34 = arith.sitofp %33 : vector<8x256xi32> to vector<8x256xf32>
    %35 = arith.truncf %34 : vector<8x256xf32> to vector<8x256xbf16>
    %cst_9 = arith.constant dense<0.000000e+00> : vector<8x256xf32>
    %36 = tpu.matmul %35, %11, %cst_9 {dimension_numbers = #tpu.dot_dimension_numbers<[1], [0], [0], [1], [0, 0, 1, 1], [], []>} : vector<8x256xbf16>, vector<256x256xbf16>, vector<8x256xf32> -> vector<8x256xf32>
    %c2 = arith.constant 2 : index
    %c0_10 = arith.constant 0 : index
    %37 = vector.load %arg3[%c2, %c0_10] : memref<16x256xf32, #tpu.memory_space<vmem>>, vector<1x256xf32>
    %38 = vector.broadcast %37 : vector<1x256xf32> to vector<8x256xf32>
    %39 = arith.mulf %36, %38 : vector<8x256xf32>
    %40 = arith.addf %30, %39 : vector<8x256xf32>
    %c3_i32 = arith.constant 3 : i32
    %41 = vector.broadcast %c3_i32 : i32 to vector<8x256xi32>
    %42 = arith.cmpi eq, %10, %41 : vector<8x256xi32>
    %43 = arith.extui %42 : vector<8x256xi1> to vector<8x256xi32>
    %44 = arith.sitofp %43 : vector<8x256xi32> to vector<8x256xf32>
    %45 = arith.truncf %44 : vector<8x256xf32> to vector<8x256xbf16>
    %cst_11 = arith.constant dense<0.000000e+00> : vector<8x256xf32>
    %46 = tpu.matmul %45, %11, %cst_11 {dimension_numbers = #tpu.dot_dimension_numbers<[1], [0], [0], [1], [0, 0, 1, 1], [], []>} : vector<8x256xbf16>, vector<256x256xbf16>, vector<8x256xf32> -> vector<8x256xf32>
    %c3 = arith.constant 3 : index
    %c0_12 = arith.constant 0 : index
    %47 = vector.load %arg3[%c3, %c0_12] : memref<16x256xf32, #tpu.memory_space<vmem>>, vector<1x256xf32>
    %48 = vector.broadcast %47 : vector<1x256xf32> to vector<8x256xf32>
    %49 = arith.mulf %46, %48 : vector<8x256xf32>
    %50 = arith.addf %40, %49 : vector<8x256xf32>
    %c4_i32 = arith.constant 4 : i32
    %51 = vector.broadcast %c4_i32 : i32 to vector<8x256xi32>
    %52 = arith.cmpi eq, %10, %51 : vector<8x256xi32>
    %53 = arith.extui %52 : vector<8x256xi1> to vector<8x256xi32>
    %54 = arith.sitofp %53 : vector<8x256xi32> to vector<8x256xf32>
    %55 = arith.truncf %54 : vector<8x256xf32> to vector<8x256xbf16>
    %cst_13 = arith.constant dense<0.000000e+00> : vector<8x256xf32>
    %56 = tpu.matmul %55, %11, %cst_13 {dimension_numbers = #tpu.dot_dimension_numbers<[1], [0], [0], [1], [0, 0, 1, 1], [], []>} : vector<8x256xbf16>, vector<256x256xbf16>, vector<8x256xf32> -> vector<8x256xf32>
    %c4 = arith.constant 4 : index
    %c0_14 = arith.constant 0 : index
    %57 = vector.load %arg3[%c4, %c0_14] : memref<16x256xf32, #tpu.memory_space<vmem>>, vector<1x256xf32>
    %58 = vector.broadcast %57 : vector<1x256xf32> to vector<8x256xf32>
    %59 = arith.mulf %56, %58 : vector<8x256xf32>
    %60 = arith.addf %50, %59 : vector<8x256xf32>
    %c5_i32 = arith.constant 5 : i32
    %61 = vector.broadcast %c5_i32 : i32 to vector<8x256xi32>
    %62 = arith.cmpi eq, %10, %61 : vector<8x256xi32>
    %63 = arith.extui %62 : vector<8x256xi1> to vector<8x256xi32>
    %64 = arith.sitofp %63 : vector<8x256xi32> to vector<8x256xf32>
    %65 = arith.truncf %64 : vector<8x256xf32> to vector<8x256xbf16>
    %cst_15 = arith.constant dense<0.000000e+00> : vector<8x256xf32>
    %66 = tpu.matmul %65, %11, %cst_15 {dimension_numbers = #tpu.dot_dimension_numbers<[1], [0], [0], [1], [0, 0, 1, 1], [], []>} : vector<8x256xbf16>, vector<256x256xbf16>, vector<8x256xf32> -> vector<8x256xf32>
    %c5 = arith.constant 5 : index
    %c0_16 = arith.constant 0 : index
    %67 = vector.load %arg3[%c5, %c0_16] : memref<16x256xf32, #tpu.memory_space<vmem>>, vector<1x256xf32>
    %68 = vector.broadcast %67 : vector<1x256xf32> to vector<8x256xf32>
    %69 = arith.mulf %66, %68 : vector<8x256xf32>
    %70 = arith.addf %60, %69 : vector<8x256xf32>
    %c6_i32 = arith.constant 6 : i32
    %71 = vector.broadcast %c6_i32 : i32 to vector<8x256xi32>
    %72 = arith.cmpi eq, %10, %71 : vector<8x256xi32>
    %73 = arith.extui %72 : vector<8x256xi1> to vector<8x256xi32>
    %74 = arith.sitofp %73 : vector<8x256xi32> to vector<8x256xf32>
    %75 = arith.truncf %74 : vector<8x256xf32> to vector<8x256xbf16>
    %cst_17 = arith.constant dense<0.000000e+00> : vector<8x256xf32>
    %76 = tpu.matmul %75, %11, %cst_17 {dimension_numbers = #tpu.dot_dimension_numbers<[1], [0], [0], [1], [0, 0, 1, 1], [], []>} : vector<8x256xbf16>, vector<256x256xbf16>, vector<8x256xf32> -> vector<8x256xf32>
    %c6 = arith.constant 6 : index
    %c0_18 = arith.constant 0 : index
    %77 = vector.load %arg3[%c6, %c0_18] : memref<16x256xf32, #tpu.memory_space<vmem>>, vector<1x256xf32>
    %78 = vector.broadcast %77 : vector<1x256xf32> to vector<8x256xf32>
    %79 = arith.mulf %76, %78 : vector<8x256xf32>
    %80 = arith.addf %70, %79 : vector<8x256xf32>
    %c7_i32 = arith.constant 7 : i32
    %81 = vector.broadcast %c7_i32 : i32 to vector<8x256xi32>
    %82 = arith.cmpi eq, %10, %81 : vector<8x256xi32>
    %83 = arith.extui %82 : vector<8x256xi1> to vector<8x256xi32>
    %84 = arith.sitofp %83 : vector<8x256xi32> to vector<8x256xf32>
    %85 = arith.truncf %84 : vector<8x256xf32> to vector<8x256xbf16>
    %cst_19 = arith.constant dense<0.000000e+00> : vector<8x256xf32>
    %86 = tpu.matmul %85, %11, %cst_19 {dimension_numbers = #tpu.dot_dimension_numbers<[1], [0], [0], [1], [0, 0, 1, 1], [], []>} : vector<8x256xbf16>, vector<256x256xbf16>, vector<8x256xf32> -> vector<8x256xf32>
    %c7 = arith.constant 7 : index
    %c0_20 = arith.constant 0 : index
    %87 = vector.load %arg3[%c7, %c0_20] : memref<16x256xf32, #tpu.memory_space<vmem>>, vector<1x256xf32>
    %88 = vector.broadcast %87 : vector<1x256xf32> to vector<8x256xf32>
    %89 = arith.mulf %86, %88 : vector<8x256xf32>
    %90 = arith.addf %80, %89 : vector<8x256xf32>
    %c8_i32 = arith.constant 8 : i32
    %91 = vector.broadcast %c8_i32 : i32 to vector<8x256xi32>
    %92 = arith.cmpi eq, %10, %91 : vector<8x256xi32>
    %93 = arith.extui %92 : vector<8x256xi1> to vector<8x256xi32>
    %94 = arith.sitofp %93 : vector<8x256xi32> to vector<8x256xf32>
    %95 = arith.truncf %94 : vector<8x256xf32> to vector<8x256xbf16>
    %cst_21 = arith.constant dense<0.000000e+00> : vector<8x256xf32>
    %96 = tpu.matmul %95, %11, %cst_21 {dimension_numbers = #tpu.dot_dimension_numbers<[1], [0], [0], [1], [0, 0, 1, 1], [], []>} : vector<8x256xbf16>, vector<256x256xbf16>, vector<8x256xf32> -> vector<8x256xf32>
    %c8 = arith.constant 8 : index
    %c0_22 = arith.constant 0 : index
    %97 = vector.load %arg3[%c8, %c0_22] : memref<16x256xf32, #tpu.memory_space<vmem>>, vector<1x256xf32>
    %98 = vector.broadcast %97 : vector<1x256xf32> to vector<8x256xf32>
    %99 = arith.mulf %96, %98 : vector<8x256xf32>
    %100 = arith.addf %90, %99 : vector<8x256xf32>
    %c9_i32 = arith.constant 9 : i32
    %101 = vector.broadcast %c9_i32 : i32 to vector<8x256xi32>
    %102 = arith.cmpi eq, %10, %101 : vector<8x256xi32>
    %103 = arith.extui %102 : vector<8x256xi1> to vector<8x256xi32>
    %104 = arith.sitofp %103 : vector<8x256xi32> to vector<8x256xf32>
    %105 = arith.truncf %104 : vector<8x256xf32> to vector<8x256xbf16>
    %cst_23 = arith.constant dense<0.000000e+00> : vector<8x256xf32>
    %106 = tpu.matmul %105, %11, %cst_23 {dimension_numbers = #tpu.dot_dimension_numbers<[1], [0], [0], [1], [0, 0, 1, 1], [], []>} : vector<8x256xbf16>, vector<256x256xbf16>, vector<8x256xf32> -> vector<8x256xf32>
    %c9 = arith.constant 9 : index
    %c0_24 = arith.constant 0 : index
    %107 = vector.load %arg3[%c9, %c0_24] : memref<16x256xf32, #tpu.memory_space<vmem>>, vector<1x256xf32>
    %108 = vector.broadcast %107 : vector<1x256xf32> to vector<8x256xf32>
    %109 = arith.mulf %106, %108 : vector<8x256xf32>
    %110 = arith.addf %100, %109 : vector<8x256xf32>
    %c10_i32 = arith.constant 10 : i32
    %111 = vector.broadcast %c10_i32 : i32 to vector<8x256xi32>
    %112 = arith.cmpi eq, %10, %111 : vector<8x256xi32>
    %113 = arith.extui %112 : vector<8x256xi1> to vector<8x256xi32>
    %114 = arith.sitofp %113 : vector<8x256xi32> to vector<8x256xf32>
    %115 = arith.truncf %114 : vector<8x256xf32> to vector<8x256xbf16>
    %cst_25 = arith.constant dense<0.000000e+00> : vector<8x256xf32>
    %116 = tpu.matmul %115, %11, %cst_25 {dimension_numbers = #tpu.dot_dimension_numbers<[1], [0], [0], [1], [0, 0, 1, 1], [], []>} : vector<8x256xbf16>, vector<256x256xbf16>, vector<8x256xf32> -> vector<8x256xf32>
    %c10 = arith.constant 10 : index
    %c0_26 = arith.constant 0 : index
    %117 = vector.load %arg3[%c10, %c0_26] : memref<16x256xf32, #tpu.memory_space<vmem>>, vector<1x256xf32>
    %118 = vector.broadcast %117 : vector<1x256xf32> to vector<8x256xf32>
    %119 = arith.mulf %116, %118 : vector<8x256xf32>
    %120 = arith.addf %110, %119 : vector<8x256xf32>
    %c11_i32 = arith.constant 11 : i32
    %121 = vector.broadcast %c11_i32 : i32 to vector<8x256xi32>
    %122 = arith.cmpi eq, %10, %121 : vector<8x256xi32>
    %123 = arith.extui %122 : vector<8x256xi1> to vector<8x256xi32>
    %124 = arith.sitofp %123 : vector<8x256xi32> to vector<8x256xf32>
    %125 = arith.truncf %124 : vector<8x256xf32> to vector<8x256xbf16>
    %cst_27 = arith.constant dense<0.000000e+00> : vector<8x256xf32>
    %126 = tpu.matmul %125, %11, %cst_27 {dimension_numbers = #tpu.dot_dimension_numbers<[1], [0], [0], [1], [0, 0, 1, 1], [], []>} : vector<8x256xbf16>, vector<256x256xbf16>, vector<8x256xf32> -> vector<8x256xf32>
    %c11 = arith.constant 11 : index
    %c0_28 = arith.constant 0 : index
    %127 = vector.load %arg3[%c11, %c0_28] : memref<16x256xf32, #tpu.memory_space<vmem>>, vector<1x256xf32>
    %128 = vector.broadcast %127 : vector<1x256xf32> to vector<8x256xf32>
    %129 = arith.mulf %126, %128 : vector<8x256xf32>
    %130 = arith.addf %120, %129 : vector<8x256xf32>
    %c12_i32 = arith.constant 12 : i32
    %131 = vector.broadcast %c12_i32 : i32 to vector<8x256xi32>
    %132 = arith.cmpi eq, %10, %131 : vector<8x256xi32>
    %133 = arith.extui %132 : vector<8x256xi1> to vector<8x256xi32>
    %134 = arith.sitofp %133 : vector<8x256xi32> to vector<8x256xf32>
    %135 = arith.truncf %134 : vector<8x256xf32> to vector<8x256xbf16>
    %cst_29 = arith.constant dense<0.000000e+00> : vector<8x256xf32>
    %136 = tpu.matmul %135, %11, %cst_29 {dimension_numbers = #tpu.dot_dimension_numbers<[1], [0], [0], [1], [0, 0, 1, 1], [], []>} : vector<8x256xbf16>, vector<256x256xbf16>, vector<8x256xf32> -> vector<8x256xf32>
    %c12 = arith.constant 12 : index
    %c0_30 = arith.constant 0 : index
    %137 = vector.load %arg3[%c12, %c0_30] : memref<16x256xf32, #tpu.memory_space<vmem>>, vector<1x256xf32>
    %138 = vector.broadcast %137 : vector<1x256xf32> to vector<8x256xf32>
    %139 = arith.mulf %136, %138 : vector<8x256xf32>
    %140 = arith.addf %130, %139 : vector<8x256xf32>
    %c13_i32 = arith.constant 13 : i32
    %141 = vector.broadcast %c13_i32 : i32 to vector<8x256xi32>
    %142 = arith.cmpi eq, %10, %141 : vector<8x256xi32>
    %143 = arith.extui %142 : vector<8x256xi1> to vector<8x256xi32>
    %144 = arith.sitofp %143 : vector<8x256xi32> to vector<8x256xf32>
    %145 = arith.truncf %144 : vector<8x256xf32> to vector<8x256xbf16>
    %cst_31 = arith.constant dense<0.000000e+00> : vector<8x256xf32>
    %146 = tpu.matmul %145, %11, %cst_31 {dimension_numbers = #tpu.dot_dimension_numbers<[1], [0], [0], [1], [0, 0, 1, 1], [], []>} : vector<8x256xbf16>, vector<256x256xbf16>, vector<8x256xf32> -> vector<8x256xf32>
    %c13 = arith.constant 13 : index
    %c0_32 = arith.constant 0 : index
    %147 = vector.load %arg3[%c13, %c0_32] : memref<16x256xf32, #tpu.memory_space<vmem>>, vector<1x256xf32>
    %148 = vector.broadcast %147 : vector<1x256xf32> to vector<8x256xf32>
    %149 = arith.mulf %146, %148 : vector<8x256xf32>
    %150 = arith.addf %140, %149 : vector<8x256xf32>
    %c14_i32 = arith.constant 14 : i32
    %151 = vector.broadcast %c14_i32 : i32 to vector<8x256xi32>
    %152 = arith.cmpi eq, %10, %151 : vector<8x256xi32>
    %153 = arith.extui %152 : vector<8x256xi1> to vector<8x256xi32>
    %154 = arith.sitofp %153 : vector<8x256xi32> to vector<8x256xf32>
    %155 = arith.truncf %154 : vector<8x256xf32> to vector<8x256xbf16>
    %cst_33 = arith.constant dense<0.000000e+00> : vector<8x256xf32>
    %156 = tpu.matmul %155, %11, %cst_33 {dimension_numbers = #tpu.dot_dimension_numbers<[1], [0], [0], [1], [0, 0, 1, 1], [], []>} : vector<8x256xbf16>, vector<256x256xbf16>, vector<8x256xf32> -> vector<8x256xf32>
    %c14 = arith.constant 14 : index
    %c0_34 = arith.constant 0 : index
    %157 = vector.load %arg3[%c14, %c0_34] : memref<16x256xf32, #tpu.memory_space<vmem>>, vector<1x256xf32>
    %158 = vector.broadcast %157 : vector<1x256xf32> to vector<8x256xf32>
    %159 = arith.mulf %156, %158 : vector<8x256xf32>
    %160 = arith.addf %150, %159 : vector<8x256xf32>
    %c15_i32_35 = arith.constant 15 : i32
    %161 = vector.broadcast %c15_i32_35 : i32 to vector<8x256xi32>
    %162 = arith.cmpi eq, %10, %161 : vector<8x256xi32>
    %163 = arith.extui %162 : vector<8x256xi1> to vector<8x256xi32>
    %164 = arith.sitofp %163 : vector<8x256xi32> to vector<8x256xf32>
    %165 = arith.truncf %164 : vector<8x256xf32> to vector<8x256xbf16>
    %cst_36 = arith.constant dense<0.000000e+00> : vector<8x256xf32>
    %166 = tpu.matmul %165, %11, %cst_36 {dimension_numbers = #tpu.dot_dimension_numbers<[1], [0], [0], [1], [0, 0, 1, 1], [], []>} : vector<8x256xbf16>, vector<256x256xbf16>, vector<8x256xf32> -> vector<8x256xf32>
    %c15 = arith.constant 15 : index
    %c0_37 = arith.constant 0 : index
    %167 = vector.load %arg3[%c15, %c0_37] : memref<16x256xf32, #tpu.memory_space<vmem>>, vector<1x256xf32>
    %168 = vector.broadcast %167 : vector<1x256xf32> to vector<8x256xf32>
    %169 = arith.mulf %166, %168 : vector<8x256xf32>
    %170 = arith.addf %160, %169 : vector<8x256xf32>
    %cst_38 = arith.constant 0.000000e+00 : f32
    %171 = vector.broadcast %cst_38 : f32 to vector<8x256xf32>
    %172 = arith.cmpf ogt, %170, %171 : vector<8x256xf32>
    %cst_39 = arith.constant 1.000000e+00 : f32
    %cst_40 = arith.constant -1.000000e+00 : f32
    %173 = vector.broadcast %cst_39 : f32 to vector<8x256xf32>
    %174 = vector.broadcast %cst_40 : f32 to vector<8x256xf32>
    %175 = arith.select %172, %173, %174 : vector<8x256xi1>, vector<8x256xf32>
    %176 = arith.truncf %175 : vector<8x256xf32> to vector<8x256xbf16>
    %c0_41 = arith.constant 0 : index
    %c0_42 = arith.constant 0 : index
    %177 = vector.load %arg4[%c0_41, %c0_42] : memref<256x128xbf16, #tpu.memory_space<vmem>>, vector<256x128xbf16>
    %cst_43 = arith.constant dense<0.000000e+00> : vector<8x128xf32>
    %178 = tpu.matmul %176, %177, %cst_43 {dimension_numbers = #tpu.dot_dimension_numbers<[1], [0], [0], [1], [0, 0, 1, 1], [], []>} : vector<8x256xbf16>, vector<256x128xbf16>, vector<8x128xf32> -> vector<8x128xf32>
    %c0_44 = arith.constant 0 : index
    %c0_45 = arith.constant 0 : index
    %179 = vector.load %arg5[%c0_44, %c0_45] : memref<8x128xf32, #tpu.memory_space<vmem>>, vector<8x128xf32>
    tpu.vector_store %arg5[%c0_44, %c0_45], %178 {strides = array<i32>} : memref<8x128xf32, #tpu.memory_space<vmem>>, vector<8x128xf32>,
    return
  }
  func.func @transform_0(%arg0: i32) -> (i32, i32) {
    %c0_i32 = arith.constant 0 : i32
    %c0_i32_0 = arith.constant 0 : i32
    return %arg0, %c0_i32 : i32, i32
  }
  func.func @transform_1(%arg0: i32) -> (i32, i32) {
    %c0_i32 = arith.constant 0 : i32
    %c0_i32_0 = arith.constant 0 : i32
    %c0_i32_1 = arith.constant 0 : i32
    return %c0_i32, %c0_i32_0 : i32, i32
  }
  func.func @transform_2(%arg0: i32) -> (i32, i32) {
    %c0_i32 = arith.constant 0 : i32
    %c0_i32_0 = arith.constant 0 : i32
    %c0_i32_1 = arith.constant 0 : i32
    return %c0_i32, %c0_i32_0 : i32, i32
  }
  func.func @transform_3(%arg0: i32) -> (i32, i32) {
    %c0_i32 = arith.constant 0 : i32
    %c0_i32_0 = arith.constant 0 : i32
    %c0_i32_1 = arith.constant 0 : i32
    return %c0_i32, %c0_i32_0 : i32, i32
  }
  func.func @transform_4(%arg0: i32) -> (i32, i32) {
    %c0_i32 = arith.constant 0 : i32
    %c0_i32_0 = arith.constant 0 : i32
    return %arg0, %c0_i32 : i32, i32
  }
}

</mosaic_0001>

<bundles_post_ra>
// kernel: hd_model_forward.1
= control target key start
LH: loop header
LB: loop body
LE: loop exit
PB: predicated region body
PF: predicated region fallthrough
CT: control target
= control target key end

     0   :  { %v1745_v24 = vmov 1.0|1.0   ;;  %v273_v43 = vlaneseq  ;;  %s2873_s1 = inlined_call_operand.vmem [shape: bf16[256,256], index: 1, kind: input, shape index: {}]   ;;  %s2874_s0 = inlined_call_operand.vmem [shape: f32[8,256], index: 0, kind: input, shape index: {}]   ;;  %s2875_s2 = inlined_call_operand.vmem [shape: f32[16,256], index: 2, kind: input, shape index: {}]   ;;  %s2876_s3 = inlined_call_operand.vmem [shape: bf16[256,128], index: 3, kind: input, shape index: {}]   ;;  %s2877_s4 = inlined_call_operand.vmem [shape: f32[8,128], index: 4, kind: output, shape index: {}]  }
   0x1   :  { %v1775_v0 = vld [vmem:[%s2873_s1 + $0x74] ss:$8 sps:$4 sm:$0xff]   ;;  %v1780_v1 = vld [vmem:[%s2873_s1 + $0x70] ss:$8 sps:$4 sm:$0xff]   ;;  %v1787_v2 = vld [vmem:[%s2873_s1 + $0x64] ss:$8 sps:$4 sm:$0xff]  }
   0x2   :  { %230 = vmatprep.subr.bf16.mxu0 %v1775_v0  ;;  %293 = vmatprep.subr.bf16.mxu1 %v1775_v0  ;;  %v1794_v3 = vld [vmem:[%s2873_s1 + $0x60] ss:$8 sps:$4 sm:$0xff]   ;;  %v1801_v4 = vld [vmem:[%s2873_s1 + $0x54] ss:$8 sps:$4 sm:$0xff]   ;;  %v1808_v5 = vld [vmem:[%s2873_s1 + $0x50] ss:$8 sps:$4 sm:$0xff]  }
   0x3   :  { %231 = vmatpush1.bf16.msra.mxu0 %v1780_v1  ;;  %294 = vmatpush1.bf16.msra.mxu1 %v1780_v1  ;;  %v1815_v6 = vld [vmem:[%s2873_s1 + $0x44] ss:$8 sps:$4 sm:$0xff]   ;;  %v1822_v7 = vld [vmem:[%s2873_s1 + $0x40] ss:$8 sps:$4 sm:$0xff]   ;;  %v1829_v8 = vld [vmem:[%s2873_s1 + $0x34] ss:$8 sps:$4 sm:$0xff]  }
   0x4   :  { %232 = vmatprep.subr.bf16.mxu0 %v1787_v2  ;;  %295 = vmatprep.subr.bf16.mxu1 %v1787_v2  ;;  %v1836_v9 = vld [vmem:[%s2873_s1 + $0x30] ss:$8 sps:$4 sm:$0xff]   ;;  %v1843_v10 = vld [vmem:[%s2873_s1 + $0x24] ss:$8 sps:$4 sm:$0xff]   ;;  %v1850_v11 = vld [vmem:[%s2873_s1 + $0x20] ss:$8 sps:$4 sm:$0xff]  }
   0x5   :  { %v1857_v12 = vld [vmem:[%s2873_s1 + $0x14] ss:$8 sps:$4 sm:$0xff]   ;;  %v19_v13 = vld [vmem:[%s2874_s0 + $0x8] sm:$0xff]  ;;  %v1867_v15 = vld [vmem:[%s2873_s1 + $0x10] ss:$8 sps:$4 sm:$0xff]   ;;  %v274_v44 = vshrl.u32 %v273_v43, 7 }
   0x6   :  { %v21_v14 = vmul.f32 15.0, %v19_v13  ;;  %v1874_v16 = vld [vmem:[%s2873_s1 + $0x4] ss:$8 sps:$4 sm:$0xff]   ;;  %v1881_v19 = vld [vmem:[%s2873_s1] ss:$8 sps:$4 sm:$0xff]  }
   0x7   :  { %233 = vmatpush1.bf16.msra.mxu0 %v1794_v3  ;;  %296 = vmatpush1.bf16.msra.mxu1 %v1794_v3  ;;  %v1888_v20 = vld [vmem:[%s2873_s1 + $0xf4] ss:$8 sps:$4 sm:$0xff]   ;;  %v1899_v22 = vld [vmem:[%s2873_s1 + $0xf0] ss:$8 sps:$4 sm:$0xff]   ;;  %v1906_v23 = vld [vmem:[%s2873_s1 + $0xe4] ss:$8 sps:$4 sm:$0xff]  }
   0x8   :  { %234 = vmatprep.subr.bf16.mxu0 %v1801_v4  ;;  %297 = vmatprep.subr.bf16.mxu1 %v1801_v4  ;;  %v1457_v17 = vmax.f32 %v21_v14, 0.0  ;;  %v1915_v25 = vld [vmem:[%s2873_s1 + $0xe0] ss:$8 sps:$4 sm:$0xff]   ;;  %v1922_v26 = vld [vmem:[%s2873_s1 + $0xd4] ss:$8 sps:$4 sm:$0xff]   ;;  %v2222_v45 = vsub.s32 0, %v274_v44 }
   0x9   :  { %v1929_v27 = vld [vmem:[%s2873_s1 + $0xd0] ss:$8 sps:$4 sm:$0xff]   ;;  %v1936_v28 = vld [vmem:[%s2873_s1 + $0xc4] ss:$8 sps:$4 sm:$0xff]   ;;  %v1946_v30 = vld [vmem:[%s2873_s1 + $0xc0] ss:$8 sps:$4 sm:$0xff]  }
   0xa   :  { %v1458_v18 = vmin.f32 %v1457_v17, 15.0  ;;  %v18_v29 = vld [vmem:[%s2874_s0] sm:$0xff]  ;;  %v1953_v32 = vld [vmem:[%s2873_s1 + $0xb4] ss:$8 sps:$4 sm:$0xff]   ;;  %v1960_v33 = vld [vmem:[%s2873_s1 + $0xb0] ss:$8 sps:$4 sm:$0xff]  }
   0xb   :  { %235 = vmatpush1.bf16.msra.mxu0 %v1808_v5  ;;  %298 = vmatpush1.bf16.msra.mxu1 %v1808_v5  ;;  %v20_v31 = vmul.f32 15.0, %v18_v29  ;;  %v1967_v35 = vld [vmem:[%s2873_s1 + $0xa4] ss:$8 sps:$4 sm:$0xff]   ;;  %v1974_v36 = vld [vmem:[%s2873_s1 + $0xa0] ss:$8 sps:$4 sm:$0xff]   ;;  %v2234_v48 = vsub.s32 1, %v274_v44 }
   0xc   :  { %236 = vmatprep.subr.bf16.mxu0 %v1815_v6  ;;  %299 = vmatprep.subr.bf16.mxu1 %v1815_v6  ;;  %v1890_v21 = vcvt.f32.s32 %v1458_v18  ;;  %v1981_v38 = vld [vmem:[%s2873_s1 + $0x94] ss:$8 sps:$4 sm:$0xff]   ;;  %v1988_v39 = vld [vmem:[%s2873_s1 + $0x90] ss:$8 sps:$4 sm:$0xff]   ;;  %v1997_v41 = vld [vmem:[%s2873_s1 + $0x84] ss:$8 sps:$4 sm:$0xff]  }
   0xd   :  { %v1454_v34 = vmax.f32 %v20_v31, 0.0  ;;  %v2004_v42 = vld [vmem:[%s2873_s1 + $0x80] ss:$8 sps:$4 sm:$0xff]  }
   0xe   :  { %vm63_vm0 = vcmp.eq.s32.totalorder %v1890_v21, 0  ;;  %vm286_vm1 = vcmp.eq.s32.totalorder %v1890_v21, 1  ;;  %vm352_vm7 = vcmp.eq.s32.totalorder %v1890_v21, 2  ;;  %vm418_vm9 = vcmp.eq.s32.totalorder %v1890_v21, 3 }
   0xf   :  { %237 = vmatpush1.bf16.msra.mxu0 %v1822_v7  ;;  %300 = vmatpush1.bf16.msra.mxu1 %v1822_v7  ;;  %vm1494_vm2 = vmpackc.low %vm63_vm0, %vm63_vm0  ;;  %v1455_v37 = vmin.f32 %v1454_v34, 15.0  ;;  %vm484_vm15 = vcmp.eq.s32.totalorder %v1890_v21, 4  ;;  %v271_v46 = vld [vmem:[%s2875_s2] ss:$8 sm:$0x3] }
  0x10   :  { %238 = vmatprep.subr.bf16.mxu0 %v1829_v8  ;;  %301 = vmatprep.subr.bf16.mxu1 %v1829_v8  ;;  %vm1500_vm3 = vmpackc.low %vm286_vm1, %vm286_vm1  ;;  %vm550_vm1 = vcmp.eq.s32.totalorder %v1890_v21, 5  ;;  %v1504_v47 = vld [vmem:[%s2875_s2 + $0x1] ss:$8 sm:$0x3]  ;;  %v276_v49 = vrot.slane %v271_v46, %v2222_v45  ;;  %v280_v51 = vrot.slane %v271_v46, %v2234_v48  ;;  %v2581_v46 = vld [vmem:[%s2873_s1 + $0xe4] ss:$8 sps:$4 sm:$0xff]  }
  0x11   :  { %1495 = vmatprep.mubr.msk.bf16.mxu0 %vm1494_vm2, %v1745_v24  ;;  %1501 = vmatprep.mubr.msk.bf16.mxu1 %vm1500_vm3, %v1745_v24  ;;  %v1990_v40 = vcvt.f32.s32 %v1455_v37  ;;  %vm1507_vm10 = vmpackc.low %vm352_vm7, %vm352_vm7  ;;  %vm616_vm7 = vcmp.eq.s32.totalorder %v1890_v21, 6  ;;  %v340_v50 = vrot.slane %v1504_v47, %v2222_v45  ;;  %v344_v52 = vrot.slane %v1504_v47, %v2234_v48  ;;  %v1511_v29 = vld [vmem:[%s2875_s2 + $0x2] ss:$8 sm:$0x3] }
  0x12   :  { %vm1514_vm11 = vmpackc.low %vm418_vm9, %vm418_vm9  ;;  %vm682_vm9 = vcmp.eq.s32.totalorder %v1890_v21, 7  ;;  %v1518_v31 = vld [vmem:[%s2875_s2 + $0x3] ss:$8 sm:$0x3]  ;;  %v406_v34 = vrot.slane %v1511_v29, %v2222_v45  ;;  %v410_v43 = vrot.slane %v1511_v29, %v2234_v48  ;;  %v2539_v29 = vld [vmem:[%s2873_s1 + $0x14] ss:$8 sps:$4 sm:$0xff]  }
  0x13   :  { %239 = vmatpush1.bf16.msra.mxu0 %v1836_v9  ;;  %302 = vmatpush1.bf16.msra.mxu1 %v1836_v9  ;;  %vm62_vm4 = vcmp.eq.s32.totalorder %v1990_v40, 0  ;;  %vm285_vm5 = vcmp.eq.s32.totalorder %v1990_v40, 1  ;;  %vm351_vm12 = vcmp.eq.s32.totalorder %v1990_v40, 2  ;;  %vm417_vm13 = vcmp.eq.s32.totalorder %v1990_v40, 3  ;;  %vm1521_vm2 = vmpackc.low %vm484_vm15, %vm484_vm15 }
  0x14   :  { %240 = vmatprep.subr.bf16.mxu0 %v1843_v10  ;;  %303 = vmatprep.subr.bf16.mxu1 %v1843_v10  ;;  %vm1496_vm6 = vmpackc.low %vm62_vm4, %vm62_vm4  ;;  %vm483_vm4 = vcmp.eq.s32.totalorder %v1990_v40, 4  ;;  %vm748_vm15 = vcmp.eq.s32.totalorder %v1890_v21, 8  ;;  %v472_v37 = vrot.slane %v1518_v31, %v2222_v45  ;;  %v476_v44 = vrot.slane %v1518_v31, %v2234_v48  ;;  %v2546_v31 = vld [vmem:[%s2873_s1 + $0x10] ss:$8 sps:$4 sm:$0xff]  }
  0x15   :  { %vm1502_vm8 = vmpackc.low %vm285_vm5, %vm285_vm5  ;;  %vm549_vm5 = vcmp.eq.s32.totalorder %v1990_v40, 5 }
  0x16   :  { %vm1509_vm14 = vmpackc.low %vm351_vm12, %vm351_vm12  ;;  %vm615_vm12 = vcmp.eq.s32.totalorder %v1990_v40, 6 }
  0x17   :  { %241 = vmatpush1.bf16.msra.mxu0 %v1850_v11  ;;  %304 = vmatpush1.bf16.msra.mxu1 %v1850_v11  ;;  %vm1516_vm0 = vmpackc.low %vm417_vm13, %vm417_vm13  ;;  %vm681_vm13 = vcmp.eq.s32.totalorder %v1990_v40, 7 }
  0x18   :  { %242 = vmatprep.subr.bf16.mxu0 %v1857_v12  ;;  %305 = vmatprep.subr.bf16.mxu1 %v1857_v12  ;;  %vm1528_vm3 = vmpackc.low %vm550_vm1, %vm550_vm1  ;;  %vm814_vm1 = vcmp.eq.s32.totalorder %v1890_v21, 9 }
  0x1b   :  { %243 = vmatpush1.bf16.msra.mxu0 %v1867_v15  ;;  %306 = vmatpush1.bf16.msra.mxu1 %v1867_v15 }
  0x1c   :  { %244 = vmatprep.subr.bf16.mxu0 %v1874_v16  ;;  %307 = vmatprep.subr.bf16.mxu1 %v1874_v16 }
  0x1f   :  { %245 = vmatpush1.bf16.msra.mxu0 %v1881_v19  ;;  %308 = vmatpush1.bf16.msra.mxu1 %v1881_v19 }
  0x20   :  { %246 = vmatprep.subr.bf16.mxu0 %v1888_v20  ;;  %309 = vmatprep.subr.bf16.mxu1 %v1888_v20 }
  0x23   :  { %247 = vmatpush2.bf16.msra.mxu0 %v1899_v22  ;;  %310 = vmatpush2.bf16.msra.mxu1 %v1899_v22 }
  0x24   :  { %248 = vmatprep.subr.bf16.mxu0 %v1906_v23  ;;  %311 = vmatprep.subr.bf16.mxu1 %v1906_v23 }
  0x27   :  { %249 = vmatpush2.bf16.msra.mxu0 %v1915_v25  ;;  %312 = vmatpush2.bf16.msra.mxu1 %v1915_v25 }
  0x28   :  { %250 = vmatprep.subr.bf16.mxu0 %v1922_v26  ;;  %313 = vmatprep.subr.bf16.mxu1 %v1922_v26 }
  0x2b   :  { %251 = vmatpush2.bf16.msra.mxu0 %v1929_v27  ;;  %314 = vmatpush2.bf16.msra.mxu1 %v1929_v27 }
  0x2c   :  { %252 = vmatprep.subr.bf16.mxu0 %v1936_v28  ;;  %315 = vmatprep.subr.bf16.mxu1 %v1936_v28 }
  0x2f   :  { %253 = vmatpush2.bf16.msra.mxu0 %v1946_v30  ;;  %316 = vmatpush2.bf16.msra.mxu1 %v1946_v30 }
  0x30   :  { %254 = vmatprep.subr.bf16.mxu0 %v1953_v32  ;;  %317 = vmatprep.subr.bf16.mxu1 %v1953_v32 }
  0x33   :  { %255 = vmatpush2.bf16.msra.mxu0 %v1960_v33  ;;  %318 = vmatpush2.bf16.msra.mxu1 %v1960_v33 }
  0x34   :  { %256 = vmatprep.subr.bf16.mxu0 %v1967_v35  ;;  %319 = vmatprep.subr.bf16.mxu1 %v1967_v35 }
  0x37   :  { %257 = vmatpush2.bf16.msra.mxu0 %v1974_v36  ;;  %320 = vmatpush2.bf16.msra.mxu1 %v1974_v36 }
  0x38   :  { %258 = vmatprep.subr.bf16.mxu0 %v1981_v38  ;;  %321 = vmatprep.subr.bf16.mxu1 %v1981_v38 }
  0x3b   :  { %259 = vmatpush2.bf16.msra.mxu0 %v1988_v39  ;;  %322 = vmatpush2.bf16.msra.mxu1 %v1988_v39 }
  0x3c   :  { %260 = vmatprep.subr.bf16.mxu0 %v1997_v41  ;;  %323 = vmatprep.subr.bf16.mxu1 %v1997_v41 }
  0x3f   :  { %261 = vmatpush2.bf16.msra.mxu0 %v2004_v42  ;;  %324 = vmatpush2.bf16.msra.mxu1 %v2004_v42 }
  0x40   :  { %359 = vmatprep.subr.bf16.mxu0 %v1775_v0  ;;  %425 = vmatprep.subr.bf16.mxu1 %v1775_v0 }
  0x42   :  { %1497 = vmatmul.mubr.msk.bf16.vlgmr.msra.gmra.mxu0 %vm1496_vm6, %v1745_v24  ;;  %1503 = vmatmul.mubr.msk.bf16.vlgmr.msra.gmra.mxu1 %vm1502_vm8, %v1745_v24  ;;  %vm1523_vm6 = vmpackc.low %vm483_vm4, %vm483_vm4  ;;  %vm747_vm4 = vcmp.eq.s32.totalorder %v1990_v40, 8 }
  0x43   :  { %360 = vmatpush1.bf16.msra.mxu0 %v1780_v1  ;;  %426 = vmatpush1.bf16.msra.mxu1 %v1780_v1  ;;  %vm1530_vm8 = vmpackc.low %vm549_vm5, %vm549_vm5  ;;  %vm813_vm5 = vcmp.eq.s32.totalorder %v1990_v40, 9 }
  0x44   :  { %361 = vmatprep.subr.bf16.mxu0 %v1787_v2  ;;  %427 = vmatprep.subr.bf16.mxu1 %v1787_v2 }
  0x45   :  { %1508 = vmatprep.mubr.msk.bf16.mxu0 %vm1507_vm10, %v1745_v24  ;;  %1515 = vmatprep.mubr.msk.bf16.mxu1 %vm1514_vm11, %v1745_v24  ;;  %vm1535_vm10 = vmpackc.low %vm616_vm7, %vm616_vm7  ;;  %vm880_vm7 = vcmp.eq.s32.totalorder %v1890_v21, 10 }
  0x46   :  { %vm1542_vm11 = vmpackc.low %vm682_vm9, %vm682_vm9  ;;  %vm946_vm9 = vcmp.eq.s32.totalorder %v1890_v21, 11 }
  0x47   :  { %362 = vmatpush1.bf16.msra.mxu0 %v1794_v3  ;;  %428 = vmatpush1.bf16.msra.mxu1 %v1794_v3 }
  0x48   :  { %363 = vmatprep.subr.bf16.mxu0 %v1801_v4  ;;  %429 = vmatprep.subr.bf16.mxu1 %v1801_v4 }
  0x4b   :  { %364 = vmatpush1.bf16.msra.mxu0 %v1808_v5  ;;  %430 = vmatpush1.bf16.msra.mxu1 %v1808_v5 }
  0x4c   :  { %365 = vmatprep.subr.bf16.mxu0 %v1815_v6  ;;  %431 = vmatprep.subr.bf16.mxu1 %v1815_v6 }
  0x4f   :  { %366 = vmatpush1.bf16.msra.mxu0 %v1822_v7  ;;  %432 = vmatpush1.bf16.msra.mxu1 %v1822_v7 }
  0x50   :  { %367 = vmatprep.subr.bf16.mxu0 %v1829_v8  ;;  %433 = vmatprep.subr.bf16.mxu1 %v1829_v8 }
  0x53   :  { %368 = vmatpush1.bf16.msra.mxu0 %v1836_v9  ;;  %434 = vmatpush1.bf16.msra.mxu1 %v1836_v9 }
  0x54   :  { %369 = vmatprep.subr.bf16.mxu0 %v1843_v10  ;;  %435 = vmatprep.subr.bf16.mxu1 %v1843_v10 }
  0x57   :  { %370 = vmatpush1.bf16.msra.mxu0 %v1850_v11  ;;  %436 = vmatpush1.bf16.msra.mxu1 %v1850_v11 }
  0x58   :  { %371 = vmatprep.subr.bf16.mxu0 %v1857_v12  ;;  %437 = vmatprep.subr.bf16.mxu1 %v1857_v12 }
  0x5b   :  { %372 = vmatpush1.bf16.msra.mxu0 %v1867_v15  ;;  %438 = vmatpush1.bf16.msra.mxu1 %v1867_v15 }
  0x5c   :  { %373 = vmatprep.subr.bf16.mxu0 %v1874_v16  ;;  %439 = vmatprep.subr.bf16.mxu1 %v1874_v16 }
  0x5f   :  { %374 = vmatpush1.bf16.msra.mxu0 %v1881_v19  ;;  %440 = vmatpush1.bf16.msra.mxu1 %v1881_v19 }
  0x60   :  { %375 = vmatprep.subr.bf16.mxu0 %v1888_v20  ;;  %441 = vmatprep.subr.bf16.mxu1 %v1888_v20 }
  0x63   :  { %376 = vmatpush2.bf16.msra.mxu0 %v1899_v22  ;;  %442 = vmatpush2.bf16.msra.mxu1 %v1899_v22 }
  0x64   :  { %377 = vmatprep.subr.bf16.mxu0 %v1906_v23  ;;  %443 = vmatprep.subr.bf16.mxu1 %v1906_v23 }
  0x67   :  { %378 = vmatpush2.bf16.msra.mxu0 %v1915_v25  ;;  %444 = vmatpush2.bf16.msra.mxu1 %v1915_v25 }
  0x68   :  { %379 = vmatprep.subr.bf16.mxu0 %v1922_v26  ;;  %445 = vmatprep.subr.bf16.mxu1 %v1922_v26 }
  0x6b   :  { %380 = vmatpush2.bf16.msra.mxu0 %v1929_v27  ;;  %446 = vmatpush2.bf16.msra.mxu1 %v1929_v27 }
  0x6c   :  { %381 = vmatprep.subr.bf16.mxu0 %v1936_v28  ;;  %447 = vmatprep.subr.bf16.mxu1 %v1936_v28 }
  0x6f   :  { %382 = vmatpush2.bf16.msra.mxu0 %v1946_v30  ;;  %448 = vmatpush2.bf16.msra.mxu1 %v1946_v30 }
  0x70   :  { %383 = vmatprep.subr.bf16.mxu0 %v1953_v32  ;;  %449 = vmatprep.subr.bf16.mxu1 %v1953_v32 }
  0x73   :  { %384 = vmatpush2.bf16.msra.mxu0 %v1960_v33  ;;  %450 = vmatpush2.bf16.msra.mxu1 %v1960_v33 }
  0x74   :  { %385 = vmatprep.subr.bf16.mxu0 %v1967_v35  ;;  %451 = vmatprep.subr.bf16.mxu1 %v1967_v35 }
  0x77   :  { %386 = vmatpush2.bf16.msra.mxu0 %v1974_v36  ;;  %452 = vmatpush2.bf16.msra.mxu1 %v1974_v36 }
  0x78   :  { %387 = vmatprep.subr.bf16.mxu0 %v1981_v38  ;;  %453 = vmatprep.subr.bf16.mxu1 %v1981_v38 }
  0x7b   :  { %388 = vmatpush2.bf16.msra.mxu0 %v1988_v39  ;;  %454 = vmatpush2.bf16.msra.mxu1 %v1988_v39 }
  0x7c   :  { %389 = vmatprep.subr.bf16.mxu0 %v1997_v41  ;;  %455 = vmatprep.subr.bf16.mxu1 %v1997_v41 }
  0x7f   :  { %390 = vmatpush2.bf16.msra.mxu0 %v2004_v42  ;;  %456 = vmatpush2.bf16.msra.mxu1 %v2004_v42 }
  0x80   :  { %491 = vmatprep.subr.bf16.mxu0 %v1775_v0  ;;  %557 = vmatprep.subr.bf16.mxu1 %v1775_v0 }
  0x82   :  { %1510 = vmatmul.mubr.msk.bf16.vlgmr.msra.gmra.mxu0 %vm1509_vm14, %v1745_v24  ;;  %1517 = vmatmul.mubr.msk.bf16.vlgmr.msra.gmra.mxu1 %vm1516_vm0, %v1745_v24  ;;  %vm1537_vm14 = vmpackc.low %vm615_vm12, %vm615_vm12  ;;  %vm879_vm12 = vcmp.eq.s32.totalorder %v1990_v40, 10 }
  0x83   :  { %492 = vmatpush1.bf16.msra.mxu0 %v1780_v1  ;;  %558 = vmatpush1.bf16.msra.mxu1 %v1780_v1  ;;  %vm1544_vm0 = vmpackc.low %vm681_vm13, %vm681_vm13  ;;  %vm945_vm13 = vcmp.eq.s32.totalorder %v1990_v40, 11 }
  0x84   :  { %493 = vmatprep.subr.bf16.mxu0 %v1787_v2  ;;  %559 = vmatprep.subr.bf16.mxu1 %v1787_v2 }
  0x85   :  { %1522 = vmatprep.mubr.msk.bf16.mxu0 %vm1521_vm2, %v1745_v24  ;;  %1529 = vmatprep.mubr.msk.bf16.mxu1 %vm1528_vm3, %v1745_v24  ;;  %vm2246_vm2 = vmpackc.low %vm748_vm15, %vm748_vm15  ;;  %vm1012_vm15 = vcmp.eq.s32.totalorder %v1890_v21, 12 }
  0x86   :  { %vm1556_vm3 = vmpackc.low %vm814_vm1, %vm814_vm1  ;;  %vm1078_vm1 = vcmp.eq.s32.totalorder %v1890_v21, 13 }
  0x87   :  { %494 = vmatpush1.bf16.msra.mxu0 %v1794_v3  ;;  %560 = vmatpush1.bf16.msra.mxu1 %v1794_v3 }
  0x88   :  { %495 = vmatprep.subr.bf16.mxu0 %v1801_v4  ;;  %561 = vmatprep.subr.bf16.mxu1 %v1801_v4 }
  0x8b   :  { %496 = vmatpush1.bf16.msra.mxu0 %v1808_v5  ;;  %562 = vmatpush1.bf16.msra.mxu1 %v1808_v5 }
  0x8c   :  { %497 = vmatprep.subr.bf16.mxu0 %v1815_v6  ;;  %563 = vmatprep.subr.bf16.mxu1 %v1815_v6 }
  0x8f   :  { %498 = vmatpush1.bf16.msra.mxu0 %v1822_v7  ;;  %564 = vmatpush1.bf16.msra.mxu1 %v1822_v7 }
  0x90   :  { %499 = vmatprep.subr.bf16.mxu0 %v1829_v8  ;;  %565 = vmatprep.subr.bf16.mxu1 %v1829_v8 }
  0x93   :  { %500 = vmatpush1.bf16.msra.mxu0 %v1836_v9  ;;  %566 = vmatpush1.bf16.msra.mxu1 %v1836_v9 }
  0x94   :  { %501 = vmatprep.subr.bf16.mxu0 %v1843_v10  ;;  %567 = vmatprep.subr.bf16.mxu1 %v1843_v10 }
  0x97   :  { %502 = vmatpush1.bf16.msra.mxu0 %v1850_v11  ;;  %568 = vmatpush1.bf16.msra.mxu1 %v1850_v11 }
  0x98   :  { %503 = vmatprep.subr.bf16.mxu0 %v1857_v12  ;;  %569 = vmatprep.subr.bf16.mxu1 %v1857_v12 }
  0x9b   :  { %504 = vmatpush1.bf16.msra.mxu0 %v1867_v15  ;;  %570 = vmatpush1.bf16.msra.mxu1 %v1867_v15 }
  0x9c   :  { %505 = vmatprep.subr.bf16.mxu0 %v1874_v16  ;;  %571 = vmatprep.subr.bf16.mxu1 %v1874_v16 }
  0x9f   :  { %506 = vmatpush1.bf16.msra.mxu0 %v1881_v19  ;;  %572 = vmatpush1.bf16.msra.mxu1 %v1881_v19 }
  0xa0   :  { %507 = vmatprep.subr.bf16.mxu0 %v1888_v20  ;;  %573 = vmatprep.subr.bf16.mxu1 %v1888_v20 }
  0xa3   :  { %508 = vmatpush2.bf16.msra.mxu0 %v1899_v22  ;;  %574 = vmatpush2.bf16.msra.mxu1 %v1899_v22 }
  0xa4   :  { %509 = vmatprep.subr.bf16.mxu0 %v1906_v23  ;;  %575 = vmatprep.subr.bf16.mxu1 %v1906_v23 }
  0xa7   :  { %510 = vmatpush2.bf16.msra.mxu0 %v1915_v25  ;;  %576 = vmatpush2.bf16.msra.mxu1 %v1915_v25 }
  0xa8   :  { %511 = vmatprep.subr.bf16.mxu0 %v1922_v26  ;;  %577 = vmatprep.subr.bf16.mxu1 %v1922_v26 }
  0xab   :  { %512 = vmatpush2.bf16.msra.mxu0 %v1929_v27  ;;  %578 = vmatpush2.bf16.msra.mxu1 %v1929_v27 }
  0xac   :  { %513 = vmatprep.subr.bf16.mxu0 %v1936_v28  ;;  %579 = vmatprep.subr.bf16.mxu1 %v1936_v28 }
  0xaf   :  { %514 = vmatpush2.bf16.msra.mxu0 %v1946_v30  ;;  %580 = vmatpush2.bf16.msra.mxu1 %v1946_v30 }
  0xb0   :  { %515 = vmatprep.subr.bf16.mxu0 %v1953_v32  ;;  %581 = vmatprep.subr.bf16.mxu1 %v1953_v32 }
  0xb3   :  { %516 = vmatpush2.bf16.msra.mxu0 %v1960_v33  ;;  %582 = vmatpush2.bf16.msra.mxu1 %v1960_v33 }
  0xb4   :  { %517 = vmatprep.subr.bf16.mxu0 %v1967_v35  ;;  %583 = vmatprep.subr.bf16.mxu1 %v1967_v35 }
  0xb7   :  { %518 = vmatpush2.bf16.msra.mxu0 %v1974_v36  ;;  %584 = vmatpush2.bf16.msra.mxu1 %v1974_v36 }
  0xb8   :  { %519 = vmatprep.subr.bf16.mxu0 %v1981_v38  ;;  %585 = vmatprep.subr.bf16.mxu1 %v1981_v38 }
  0xbb   :  { %520 = vmatpush2.bf16.msra.mxu0 %v1988_v39  ;;  %586 = vmatpush2.bf16.msra.mxu1 %v1988_v39 }
  0xbc   :  { %521 = vmatprep.subr.bf16.mxu0 %v1997_v41  ;;  %587 = vmatprep.subr.bf16.mxu1 %v1997_v41 }
  0xbf   :  { %522 = vmatpush2.bf16.msra.mxu0 %v2004_v42  ;;  %588 = vmatpush2.bf16.msra.mxu1 %v2004_v42 }
  0xc0   :  { %623 = vmatprep.subr.bf16.mxu0 %v1775_v0  ;;  %689 = vmatprep.subr.bf16.mxu1 %v1775_v0 }
  0xc2   :  { %1524 = vmatmul.mubr.msk.bf16.vlgmr.msra.gmra.mxu0 %vm1523_vm6, %v1745_v24  ;;  %1531 = vmatmul.mubr.msk.bf16.vlgmr.msra.gmra.mxu1 %vm1530_vm8, %v1745_v24  ;;  %vm1551_vm6 = vmpackc.low %vm747_vm4, %vm747_vm4  ;;  %vm1011_vm4 = vcmp.eq.s32.totalorder %v1990_v40, 12 }
  0xc3   :  { %624 = vmatpush1.bf16.msra.mxu0 %v1780_v1  ;;  %690 = vmatpush1.bf16.msra.mxu1 %v1780_v1  ;;  %vm1558_vm8 = vmpackc.low %vm813_vm5, %vm813_vm5  ;;  %vm1077_vm5 = vcmp.eq.s32.totalorder %v1990_v40, 13 }
  0xc4   :  { %625 = vmatprep.subr.bf16.mxu0 %v1787_v2  ;;  %691 = vmatprep.subr.bf16.mxu1 %v1787_v2 }
  0xc5   :  { %1536 = vmatprep.mubr.msk.bf16.mxu0 %vm1535_vm10, %v1745_v24  ;;  %1543 = vmatprep.mubr.msk.bf16.mxu1 %vm1542_vm11, %v1745_v24  ;;  %vm2338_vm10 = vmpackc.low %vm880_vm7, %vm880_vm7  ;;  %vm1144_vm7 = vcmp.eq.s32.totalorder %v1890_v21, 14 }
  0xc6   :  { %vm1570_vm11 = vmpackc.low %vm946_vm9, %vm946_vm9  ;;  %vm1210_vm9 = vcmp.eq.s32.totalorder %v1890_v21, 15 }
  0xc7   :  { %626 = vmatpush1.bf16.msra.mxu0 %v1794_v3  ;;  %692 = vmatpush1.bf16.msra.mxu1 %v1794_v3 }
  0xc8   :  { %627 = vmatprep.subr.bf16.mxu0 %v1801_v4  ;;  %693 = vmatprep.subr.bf16.mxu1 %v1801_v4 }
  0xcb   :  { %628 = vmatpush1.bf16.msra.mxu0 %v1808_v5  ;;  %694 = vmatpush1.bf16.msra.mxu1 %v1808_v5 }
  0xcc   :  { %629 = vmatprep.subr.bf16.mxu0 %v1815_v6  ;;  %695 = vmatprep.subr.bf16.mxu1 %v1815_v6 }
  0xcf   :  { %630 = vmatpush1.bf16.msra.mxu0 %v1822_v7  ;;  %696 = vmatpush1.bf16.msra.mxu1 %v1822_v7 }
  0xd0   :  { %631 = vmatprep.subr.bf16.mxu0 %v1829_v8  ;;  %697 = vmatprep.subr.bf16.mxu1 %v1829_v8 }
  0xd3   :  { %632 = vmatpush1.bf16.msra.mxu0 %v1836_v9  ;;  %698 = vmatpush1.bf16.msra.mxu1 %v1836_v9 }
  0xd4   :  { %633 = vmatprep.subr.bf16.mxu0 %v1843_v10  ;;  %699 = vmatprep.subr.bf16.mxu1 %v1843_v10 }
  0xd7   :  { %634 = vmatpush1.bf16.msra.mxu0 %v1850_v11  ;;  %700 = vmatpush1.bf16.msra.mxu1 %v1850_v11 }
  0xd8   :  { %635 = vmatprep.subr.bf16.mxu0 %v1857_v12  ;;  %701 = vmatprep.subr.bf16.mxu1 %v1857_v12 }
  0xdb   :  { %636 = vmatpush1.bf16.msra.mxu0 %v1867_v15  ;;  %702 = vmatpush1.bf16.msra.mxu1 %v1867_v15 }
  0xdc   :  { %637 = vmatprep.subr.bf16.mxu0 %v1874_v16  ;;  %703 = vmatprep.subr.bf16.mxu1 %v1874_v16 }
  0xdf   :  { %638 = vmatpush1.bf16.msra.mxu0 %v1881_v19  ;;  %704 = vmatpush1.bf16.msra.mxu1 %v1881_v19 }
  0xe0   :  { %639 = vmatprep.subr.bf16.mxu0 %v1888_v20  ;;  %705 = vmatprep.subr.bf16.mxu1 %v1888_v20 }
  0xe3   :  { %640 = vmatpush2.bf16.msra.mxu0 %v1899_v22  ;;  %706 = vmatpush2.bf16.msra.mxu1 %v1899_v22 }
  0xe4   :  { %641 = vmatprep.subr.bf16.mxu0 %v1906_v23  ;;  %707 = vmatprep.subr.bf16.mxu1 %v1906_v23 }
  0xe7   :  { %642 = vmatpush2.bf16.msra.mxu0 %v1915_v25  ;;  %708 = vmatpush2.bf16.msra.mxu1 %v1915_v25 }
  0xe8   :  { %643 = vmatprep.subr.bf16.mxu0 %v1922_v26  ;;  %709 = vmatprep.subr.bf16.mxu1 %v1922_v26 }
  0xeb   :  { %644 = vmatpush2.bf16.msra.mxu0 %v1929_v27  ;;  %710 = vmatpush2.bf16.msra.mxu1 %v1929_v27 }
  0xec   :  { %645 = vmatprep.subr.bf16.mxu0 %v1936_v28  ;;  %711 = vmatprep.subr.bf16.mxu1 %v1936_v28 }
  0xef   :  { %646 = vmatpush2.bf16.msra.mxu0 %v1946_v30  ;;  %712 = vmatpush2.bf16.msra.mxu1 %v1946_v30 }
  0xf0   :  { %647 = vmatprep.subr.bf16.mxu0 %v1953_v32  ;;  %713 = vmatprep.subr.bf16.mxu1 %v1953_v32 }
  0xf3   :  { %648 = vmatpush2.bf16.msra.mxu0 %v1960_v33  ;;  %714 = vmatpush2.bf16.msra.mxu1 %v1960_v33 }
  0xf4   :  { %649 = vmatprep.subr.bf16.mxu0 %v1967_v35  ;;  %715 = vmatprep.subr.bf16.mxu1 %v1967_v35 }
  0xf7   :  { %650 = vmatpush2.bf16.msra.mxu0 %v1974_v36  ;;  %716 = vmatpush2.bf16.msra.mxu1 %v1974_v36 }
  0xf8   :  { %651 = vmatprep.subr.bf16.mxu0 %v1981_v38  ;;  %717 = vmatprep.subr.bf16.mxu1 %v1981_v38 }
  0xfb   :  { %652 = vmatpush2.bf16.msra.mxu0 %v1988_v39  ;;  %718 = vmatpush2.bf16.msra.mxu1 %v1988_v39 }
  0xfc   :  { %653 = vmatprep.subr.bf16.mxu0 %v1997_v41  ;;  %719 = vmatprep.subr.bf16.mxu1 %v1997_v41 }
  0xff   :  { %654 = vmatpush2.bf16.msra.mxu0 %v2004_v42  ;;  %720 = vmatpush2.bf16.msra.mxu1 %v2004_v42 }
 0x100   :  { %755 = vmatprep.subr.bf16.mxu0 %v1775_v0  ;;  %821 = vmatprep.subr.bf16.mxu1 %v1775_v0 }
 0x102   :  { %v264_v54 = vpop.f32.mrf.mxu0  ;;  %v327_v55 = vpop.f32.mrf.mxu1  ;;  %1538 = vmatmul.mubr.msk.bf16.vlgmr.msra.gmra.mxu0 %vm1537_vm14, %v1745_v24  ;;  %1545 = vmatmul.mubr.msk.bf16.vlgmr.msra.gmra.mxu1 %vm1544_vm0, %v1745_v24  ;;  %vm2422_vm14 = vmpackc.low %vm879_vm12, %vm879_vm12  ;;  %vm1143_vm12 = vcmp.eq.s32.totalorder %v1990_v40, 14 }
 0x103   :  { %v283_v56 = vmul.f32 %v276_v49, %v264_v54  ;;  %v347_v57 = vmul.f32 %v340_v50, %v327_v55  ;;  %756 = vmatpush1.bf16.msra.mxu0 %v1780_v1  ;;  %822 = vmatpush1.bf16.msra.mxu1 %v1780_v1  ;;  %vm1572_vm0 = vmpackc.low %vm945_vm13, %vm945_vm13  ;;  %vm1209_vm13 = vcmp.eq.s32.totalorder %v1990_v40, 15 }
 0x104   :  { %v266_v58 = vpop.f32.mrf.mxu0  ;;  %v329_v59 = vpop.f32.mrf.mxu1  ;;  %757 = vmatprep.subr.bf16.mxu0 %v1787_v2  ;;  %823 = vmatprep.subr.bf16.mxu1 %v1787_v2 }
 0x105   :  { %v2256_v60 = vadd.f32 %v347_v57, %v283_v56  ;;  %v284_v61 = vmul.f32 %v280_v51, %v266_v58  ;;  %v348_v62 = vmul.f32 %v344_v52, %v329_v59  ;;  %1550 = vmatprep.mubr.msk.bf16.mxu0 %vm2246_vm2, %v1745_v24  ;;  %1557 = vmatprep.mubr.msk.bf16.mxu1 %vm1556_vm3, %v1745_v24  ;;  %vm2441_vm2 = vmpackc.low %vm1012_vm15, %vm1012_vm15 }
 0x106   :  { %v268_v63 = vpop.f32.mrf.mxu0  ;;  %v331_v13 = vpop.f32.mrf.mxu1  ;;  %vm1584_vm3 = vmpackc.low %vm1078_vm1, %vm1078_vm1 }
 0x107   :  { %v2262_v14 = vadd.f32 %v348_v62, %v284_v61  ;;  %758 = vmatpush1.bf16.msra.mxu0 %v1794_v3  ;;  %824 = vmatpush1.bf16.msra.mxu1 %v1794_v3  ;;  %v2490_v61 = vld [vmem:[%s2873_s1 + $0x50] ss:$8 sps:$4 sm:$0xff]   ;;  %v2497_v62 = vld [vmem:[%s2873_s1 + $0x44] ss:$8 sps:$4 sm:$0xff]   ;;  %v2504_v63 = vld [vmem:[%s2873_s1 + $0x40] ss:$8 sps:$4 sm:$0xff]  }
 0x108   :  { %v269_v17 = vpop.f32.mrf.mxu0  ;;  %v332_v18 = vpop.f32.mrf.mxu1  ;;  %759 = vmatprep.subr.bf16.mxu0 %v1801_v4  ;;  %825 = vmatprep.subr.bf16.mxu1 %v1801_v4  ;;  %v2511_v13 = vld [vmem:[%s2873_s1 + $0x34] ss:$8 sps:$4 sm:$0xff]   ;;  %vm1600_vm15 = vmpackc.low %vm1209_vm13, %vm1209_vm13 }
 0x109   :  { %v2525_v17 = vld [vmem:[%s2873_s1 + $0x24] ss:$8 sps:$4 sm:$0xff]   ;;  %v2532_v18 = vld [vmem:[%s2873_s1 + $0x20] ss:$8 sps:$4 sm:$0xff]  }
 0x10b   :  { %760 = vmatpush1.bf16.msra.mxu0 %v1808_v5  ;;  %826 = vmatpush1.bf16.msra.mxu1 %v1808_v5 }
 0x10c   :  { %761 = vmatprep.subr.bf16.mxu0 %v1815_v6  ;;  %827 = vmatprep.subr.bf16.mxu1 %v1815_v6 }
 0x10f   :  { %762 = vmatpush1.bf16.msra.mxu0 %v1822_v7  ;;  %828 = vmatpush1.bf16.msra.mxu1 %v1822_v7 }
 0x110   :  { %763 = vmatprep.subr.bf16.mxu0 %v1829_v8  ;;  %829 = vmatprep.subr.bf16.mxu1 %v1829_v8 }
 0x113   :  { %764 = vmatpush1.bf16.msra.mxu0 %v1836_v9  ;;  %830 = vmatpush1.bf16.msra.mxu1 %v1836_v9 }
 0x114   :  { %765 = vmatprep.subr.bf16.mxu0 %v1843_v10  ;;  %831 = vmatprep.subr.bf16.mxu1 %v1843_v10 }
 0x117   :  { %766 = vmatpush1.bf16.msra.mxu0 %v1850_v11  ;;  %832 = vmatpush1.bf16.msra.mxu1 %v1850_v11 }
 0x118   :  { %767 = vmatprep.subr.bf16.mxu0 %v1857_v12  ;;  %833 = vmatprep.subr.bf16.mxu1 %v1857_v12 }
 0x11b   :  { %768 = vmatpush1.bf16.msra.mxu0 %v1867_v15  ;;  %834 = vmatpush1.bf16.msra.mxu1 %v1867_v15 }
 0x11c   :  { %769 = vmatprep.subr.bf16.mxu0 %v1874_v16  ;;  %835 = vmatprep.subr.bf16.mxu1 %v1874_v16 }
 0x11f   :  { %770 = vmatpush1.bf16.msra.mxu0 %v1881_v19  ;;  %836 = vmatpush1.bf16.msra.mxu1 %v1881_v19 }
 0x120   :  { %771 = vmatprep.subr.bf16.mxu0 %v1888_v20  ;;  %837 = vmatprep.subr.bf16.mxu1 %v1888_v20 }
 0x123   :  { %772 = vmatpush2.bf16.msra.mxu0 %v1899_v22  ;;  %838 = vmatpush2.bf16.msra.mxu1 %v1899_v22 }
 0x124   :  { %773 = vmatprep.subr.bf16.mxu0 %v1906_v23  ;;  %839 = vmatprep.subr.bf16.mxu1 %v1906_v23 }
 0x127   :  { %774 = vmatpush2.bf16.msra.mxu0 %v1915_v25  ;;  %840 = vmatpush2.bf16.msra.mxu1 %v1915_v25 }
 0x128   :  { %775 = vmatprep.subr.bf16.mxu0 %v1922_v26  ;;  %841 = vmatprep.subr.bf16.mxu1 %v1922_v26 }
 0x12b   :  { %776 = vmatpush2.bf16.msra.mxu0 %v1929_v27  ;;  %842 = vmatpush2.bf16.msra.mxu1 %v1929_v27 }
 0x12c   :  { %777 = vmatprep.subr.bf16.mxu0 %v1936_v28  ;;  %843 = vmatprep.subr.bf16.mxu1 %v1936_v28 }
 0x12f   :  { %778 = vmatpush2.bf16.msra.mxu0 %v1946_v30  ;;  %844 = vmatpush2.bf16.msra.mxu1 %v1946_v30 }
 0x130   :  { %779 = vmatprep.subr.bf16.mxu0 %v1953_v32  ;;  %845 = vmatprep.subr.bf16.mxu1 %v1953_v32 }
 0x133   :  { %780 = vmatpush2.bf16.msra.mxu0 %v1960_v33  ;;  %846 = vmatpush2.bf16.msra.mxu1 %v1960_v33 }
 0x134   :  { %781 = vmatprep.subr.bf16.mxu0 %v1967_v35  ;;  %847 = vmatprep.subr.bf16.mxu1 %v1967_v35 }
 0x137   :  { %782 = vmatpush2.bf16.msra.mxu0 %v1974_v36  ;;  %848 = vmatpush2.bf16.msra.mxu1 %v1974_v36 }
 0x138   :  { %783 = vmatprep.subr.bf16.mxu0 %v1981_v38  ;;  %849 = vmatprep.subr.bf16.mxu1 %v1981_v38 }
 0x13b   :  { %784 = vmatpush2.bf16.msra.mxu0 %v1988_v39  ;;  %850 = vmatpush2.bf16.msra.mxu1 %v1988_v39 }
 0x13c   :  { %785 = vmatprep.subr.bf16.mxu0 %v1997_v41  ;;  %851 = vmatprep.subr.bf16.mxu1 %v1997_v41 }
 0x13f   :  { %786 = vmatpush2.bf16.msra.mxu0 %v2004_v42  ;;  %852 = vmatpush2.bf16.msra.mxu1 %v2004_v42 }
 0x140   :  { %887 = vmatprep.subr.bf16.mxu0 %v1775_v0  ;;  %953 = vmatprep.subr.bf16.mxu1 %v1775_v0 }
 0x142   :  { %v393_v47 = vpop.f32.mrf.mxu0  ;;  %v459_v49 = vpop.f32.mrf.mxu1  ;;  %1552 = vmatmul.mubr.msk.bf16.vlgmr.msra.gmra.mxu0 %vm1551_vm6, %v1745_v24  ;;  %1559 = vmatmul.mubr.msk.bf16.vlgmr.msra.gmra.mxu1 %vm1558_vm8, %v1745_v24  ;;  %vm2677_vm6 = vmpackc.low %vm1011_vm4, %vm1011_vm4 }
 0x143   :  { %v413_v50 = vmul.f32 %v406_v34, %v393_v47  ;;  %v479_v51 = vmul.f32 %v472_v37, %v459_v49  ;;  %888 = vmatpush1.bf16.msra.mxu0 %v1780_v1  ;;  %954 = vmatpush1.bf16.msra.mxu1 %v1780_v1  ;;  %v2553_v34 = vld [vmem:[%s2873_s1 + $0x4] ss:$8 sps:$4 sm:$0xff]   ;;  %v2560_v37 = vld [vmem:[%s2873_s1] ss:$8 sps:$4 sm:$0xff]   ;;  %v2595_v49 = vld [vmem:[%s2873_s1 + $0xd4] ss:$8 sps:$4 sm:$0xff]  }
 0x144   :  { %v395_v0 = vpop.f32.mrf.mxu0  ;;  %v461_v52 = vpop.f32.mrf.mxu1  ;;  %889 = vmatprep.subr.bf16.mxu0 %v1787_v2  ;;  %955 = vmatprep.subr.bf16.mxu1 %v1787_v2  ;;  %v2588_v47 = vld [vmem:[%s2873_s1 + $0xe0] ss:$8 sps:$4 sm:$0xff]   ;;  %vm1586_vm8 = vmpackc.low %vm1077_vm5, %vm1077_vm5 }
 0x145   :  { %v415_v53 = vadd.f32 %v413_v50, %v2256_v60  ;;  %v414_v54 = vmul.f32 %v410_v43, %v395_v0  ;;  %v480_v55 = vmul.f32 %v476_v44, %v461_v52  ;;  %1564 = vmatprep.mubr.msk.bf16.mxu0 %vm2338_vm10, %v1745_v24  ;;  %1571 = vmatprep.mubr.msk.bf16.mxu1 %vm1570_vm11, %v1745_v24  ;;  %v2567_v43 = vld [vmem:[%s2873_s1 + $0xf4] ss:$8 sps:$4 sm:$0xff]   ;;  %v2574_v44 = vld [vmem:[%s2873_s1 + $0xf0] ss:$8 sps:$4 sm:$0xff]   ;;  %v2616_v0 = vld [vmem:[%s2873_s1 + $0xc0] ss:$8 sps:$4 sm:$0xff]  }
 0x146   :  { %v397_v56 = vpop.f32.mrf.mxu0  ;;  %v463_v57 = vpop.f32.mrf.mxu1  ;;  %v2602_v50 = vld [vmem:[%s2873_s1 + $0xd0] ss:$8 sps:$4 sm:$0xff]   ;;  %v2623_v52 = vld [vmem:[%s2873_s1 + $0xb4] ss:$8 sps:$4 sm:$0xff]   ;;  %vm2696_vm10 = vmpackc.low %vm1144_vm7, %vm1144_vm7 }
 0x147   :  { %v2353_v58 = vadd.f32 %v479_v51, %v415_v53  ;;  %v416_v1 = vadd.f32 %v414_v54, %v2262_v14  ;;  %890 = vmatpush1.bf16.msra.mxu0 %v1794_v3  ;;  %956 = vmatpush1.bf16.msra.mxu1 %v1794_v3  ;;  %v1525_v3 = vld [vmem:[%s2875_s2 + $0x4] ss:$8 sm:$0x3]  ;;  %v2518_v14 = vld [vmem:[%s2873_s1 + $0x30] ss:$8 sps:$4 sm:$0xff]   ;;  %vm1598_vm11 = vmpackc.low %vm1210_vm9, %vm1210_vm9 }
 0x148   :  { %v398_v2 = vpop.f32.mrf.mxu0  ;;  %v464_v59 = vpop.f32.mrf.mxu1  ;;  %891 = vmatprep.subr.bf16.mxu0 %v1801_v4  ;;  %957 = vmatprep.subr.bf16.mxu1 %v1801_v4  ;;  %v1532_v4 = vld [vmem:[%s2875_s2 + $0x5] ss:$8 sm:$0x3]  ;;  %v2630_v53 = vld [vmem:[%s2873_s1 + $0xb0] ss:$8 sps:$4 sm:$0xff]  }
 0x149   :  { %v2360_v60 = vadd.f32 %v480_v55, %v416_v1  ;;  %v2609_v51 = vld [vmem:[%s2873_s1 + $0xc4] ss:$8 sps:$4 sm:$0xff]   ;;  %v2644_v55 = vld [vmem:[%s2873_s1 + $0xa0] ss:$8 sps:$4 sm:$0xff]   ;;  %v2651_v56 = vld [vmem:[%s2873_s1 + $0x94] ss:$8 sps:$4 sm:$0xff]  }
 0x14a   :  { %v2637_v54 = vld [vmem:[%s2873_s1 + $0xa4] ss:$8 sps:$4 sm:$0xff]   ;;  %v2658_v57 = vld [vmem:[%s2873_s1 + $0x90] ss:$8 sps:$4 sm:$0xff]  }
 0x14b   :  { %892 = vmatpush1.bf16.msra.mxu0 %v1808_v5  ;;  %958 = vmatpush1.bf16.msra.mxu1 %v1808_v5  ;;  %v2669_v1 = vld [vmem:[%s2873_s1 + $0x84] ss:$8 sps:$4 sm:$0xff]  }
 0x14c   :  { %893 = vmatprep.subr.bf16.mxu0 %v1815_v6  ;;  %959 = vmatprep.subr.bf16.mxu1 %v1815_v6  ;;  %v538_v6 = vrot.slane %v1525_v3, %v2222_v45  ;;  %v1546_v2 = vld [vmem:[%s2875_s2 + $0x7] ss:$8 sm:$0x3] }
 0x14f   :  { %894 = vmatpush1.bf16.msra.mxu0 %v1822_v7  ;;  %960 = vmatpush1.bf16.msra.mxu1 %v1822_v7  ;;  %v604_v7 = vrot.slane %v1532_v4, %v2222_v45 }
 0x150   :  { %895 = vmatprep.subr.bf16.mxu0 %v1829_v8  ;;  %961 = vmatprep.subr.bf16.mxu1 %v1829_v8  ;;  %v2435_v8 = vld [vmem:[%s2873_s1 + $0x74] ss:$8 sps:$4 sm:$0xff]  }
 0x153   :  { %896 = vmatpush1.bf16.msra.mxu0 %v1836_v9  ;;  %962 = vmatpush1.bf16.msra.mxu1 %v1836_v9  ;;  %v542_v9 = vrot.slane %v1525_v3, %v2234_v48 }
 0x154   :  { %897 = vmatprep.subr.bf16.mxu0 %v1843_v10  ;;  %963 = vmatprep.subr.bf16.mxu1 %v1843_v10  ;;  %v608_v10 = vrot.slane %v1532_v4, %v2234_v48  ;;  %v736_v4 = vrot.slane %v1546_v2, %v2222_v45 }
 0x157   :  { %898 = vmatpush1.bf16.msra.mxu0 %v1850_v11  ;;  %964 = vmatpush1.bf16.msra.mxu1 %v1850_v11 }
 0x158   :  { %899 = vmatprep.subr.bf16.mxu0 %v1857_v12  ;;  %965 = vmatprep.subr.bf16.mxu1 %v1857_v12 }
 0x15b   :  { %900 = vmatpush1.bf16.msra.mxu0 %v1867_v15  ;;  %966 = vmatpush1.bf16.msra.mxu1 %v1867_v15 }
 0x15c   :  { %901 = vmatprep.subr.bf16.mxu0 %v1874_v16  ;;  %967 = vmatprep.subr.bf16.mxu1 %v1874_v16 }
 0x15f   :  { %902 = vmatpush1.bf16.msra.mxu0 %v1881_v19  ;;  %968 = vmatpush1.bf16.msra.mxu1 %v1881_v19 }
 0x160   :  { %903 = vmatprep.subr.bf16.mxu0 %v1888_v20  ;;  %969 = vmatprep.subr.bf16.mxu1 %v1888_v20  ;;  %v2452_v20 = vld [vmem:[%s2873_s1 + $0x70] ss:$8 sps:$4 sm:$0xff]  }
 0x163   :  { %904 = vmatpush2.bf16.msra.mxu0 %v1899_v22  ;;  %970 = vmatpush2.bf16.msra.mxu1 %v1899_v22 }
 0x164   :  { %905 = vmatprep.subr.bf16.mxu0 %v1906_v23  ;;  %971 = vmatprep.subr.bf16.mxu1 %v1906_v23 }
 0x167   :  { %906 = vmatpush2.bf16.msra.mxu0 %v1915_v25  ;;  %972 = vmatpush2.bf16.msra.mxu1 %v1915_v25  ;;  %v2459_v25 = vld [vmem:[%s2873_s1 + $0x64] ss:$8 sps:$4 sm:$0xff]  }
 0x168   :  { %907 = vmatprep.subr.bf16.mxu0 %v1922_v26  ;;  %973 = vmatprep.subr.bf16.mxu1 %v1922_v26 }
 0x16b   :  { %908 = vmatpush2.bf16.msra.mxu0 %v1929_v27  ;;  %974 = vmatpush2.bf16.msra.mxu1 %v1929_v27 }
 0x16c   :  { %909 = vmatprep.subr.bf16.mxu0 %v1936_v28  ;;  %975 = vmatprep.subr.bf16.mxu1 %v1936_v28 }
 0x16f   :  { %910 = vmatpush2.bf16.msra.mxu0 %v1946_v30  ;;  %976 = vmatpush2.bf16.msra.mxu1 %v1946_v30 }
 0x170   :  { %911 = vmatprep.subr.bf16.mxu0 %v1953_v32  ;;  %977 = vmatprep.subr.bf16.mxu1 %v1953_v32 }
 0x173   :  { %912 = vmatpush2.bf16.msra.mxu0 %v1960_v33  ;;  %978 = vmatpush2.bf16.msra.mxu1 %v1960_v33 }
 0x174   :  { %913 = vmatprep.subr.bf16.mxu0 %v1967_v35  ;;  %979 = vmatprep.subr.bf16.mxu1 %v1967_v35 }
 0x177   :  { %914 = vmatpush2.bf16.msra.mxu0 %v1974_v36  ;;  %980 = vmatpush2.bf16.msra.mxu1 %v1974_v36  ;;  %v2474_v36 = vld [vmem:[%s2873_s1 + $0x60] ss:$8 sps:$4 sm:$0xff]  }
 0x178   :  { %915 = vmatprep.subr.bf16.mxu0 %v1981_v38  ;;  %981 = vmatprep.subr.bf16.mxu1 %v1981_v38 }
 0x17b   :  { %916 = vmatpush2.bf16.msra.mxu0 %v1988_v39  ;;  %982 = vmatpush2.bf16.msra.mxu1 %v1988_v39 }
 0x17c   :  { %917 = vmatprep.subr.bf16.mxu0 %v1997_v41  ;;  %983 = vmatprep.subr.bf16.mxu1 %v1997_v41  ;;  %v2481_v41 = vld [vmem:[%s2873_s1 + $0x54] ss:$8 sps:$4 sm:$0xff]  }
 0x17f   :  { %918 = vmatpush2.bf16.msra.mxu0 %v2004_v42  ;;  %984 = vmatpush2.bf16.msra.mxu1 %v2004_v42 }
 0x180   :  { %1019 = vmatprep.subr.bf16.mxu0 %v2435_v8  ;;  %1085 = vmatprep.subr.bf16.mxu1 %v2435_v8 }
 0x182   :  { %v525_v12 = vpop.f32.mrf.mxu0  ;;  %v591_v15 = vpop.f32.mrf.mxu1  ;;  %1566 = vmatmul.mubr.msk.bf16.vlgmr.msra.gmra.mxu0 %vm2422_vm14, %v1745_v24  ;;  %1573 = vmatmul.mubr.msk.bf16.vlgmr.msra.gmra.mxu1 %vm1572_vm0, %v1745_v24  ;;  %vm1593_vm14 = vmpackc.low %vm1143_vm12, %vm1143_vm12 }
 0x183   :  { %v545_v16 = vmul.f32 %v538_v6, %v525_v12  ;;  %v611_v19 = vmul.f32 %v604_v7, %v591_v15  ;;  %1020 = vmatpush1.bf16.msra.mxu0 %v2452_v20  ;;  %1086 = vmatpush1.bf16.msra.mxu1 %v2452_v20  ;;  %v740_v6 = vrot.slane %v1546_v2, %v2234_v48 }
 0x184   :  { %v527_v22 = vpop.f32.mrf.mxu0  ;;  %v593_v23 = vpop.f32.mrf.mxu1  ;;  %1021 = vmatprep.subr.bf16.mxu0 %v2459_v25  ;;  %1087 = vmatprep.subr.bf16.mxu1 %v2459_v25 }
 0x185   :  { %v547_v26 = vadd.f32 %v545_v16, %v2353_v58  ;;  %v546_v27 = vmul.f32 %v542_v9, %v527_v22  ;;  %v612_v28 = vmul.f32 %v608_v10, %v593_v23  ;;  %1578 = vmatprep.mubr.msk.bf16.mxu0 %vm2441_vm2, %v1745_v24  ;;  %1585 = vmatprep.mubr.msk.bf16.mxu1 %vm1584_vm3, %v1745_v24  ;;  %v1539_v58 = vld [vmem:[%s2875_s2 + $0x6] ss:$8 sm:$0x3] }
 0x186   :  { %v529_v30 = vpop.f32.mrf.mxu0  ;;  %v595_v32 = vpop.f32.mrf.mxu1  ;;  %v670_v3 = vrot.slane %v1539_v58, %v2222_v45  ;;  %v674_v5 = vrot.slane %v1539_v58, %v2234_v48 }
 0x187   :  { %v2468_v33 = vadd.f32 %v611_v19, %v547_v26  ;;  %v548_v35 = vadd.f32 %v546_v27, %v2360_v60  ;;  %1022 = vmatpush1.bf16.msra.mxu0 %v2474_v36  ;;  %1088 = vmatpush1.bf16.msra.mxu1 %v2474_v36  ;;  %v2685_v60 = vld [vmem:[%s2873_s1 + $0x80] ss:$8 sps:$4 sm:$0xff]   ;;  %v1553_v30 = vld [vmem:[%s2875_s2 + $0x10] ss:$8 sm:$0x3] }
 0x188   :  { %v530_v38 = vpop.f32.mrf.mxu0  ;;  %v596_v39 = vpop.f32.mrf.mxu1  ;;  %1023 = vmatprep.subr.bf16.mxu0 %v2481_v41  ;;  %1089 = vmatprep.subr.bf16.mxu1 %v2481_v41  ;;  %v1560_v32 = vld [vmem:[%s2875_s2 + $0x11] ss:$8 sm:$0x3] }
 0x189   :  { %v2485_v42 = vadd.f32 %v612_v28, %v548_v35  ;;  %v868_v35 = vrot.slane %v1560_v32, %v2222_v45  ;;  %v872_v38 = vrot.slane %v1560_v32, %v2234_v48 }
 0x18b   :  { %1024 = vmatpush1.bf16.msra.mxu0 %v2490_v61  ;;  %1090 = vmatpush1.bf16.msra.mxu1 %v2490_v61 }
 0x18c   :  { %1025 = vmatprep.subr.bf16.mxu0 %v2497_v62  ;;  %1091 = vmatprep.subr.bf16.mxu1 %v2497_v62 }
 0x18f   :  { %1026 = vmatpush1.bf16.msra.mxu0 %v2504_v63  ;;  %1092 = vmatpush1.bf16.msra.mxu1 %v2504_v63 }
 0x190   :  { %1027 = vmatprep.subr.bf16.mxu0 %v2511_v13  ;;  %1093 = vmatprep.subr.bf16.mxu1 %v2511_v13 }
 0x193   :  { %1028 = vmatpush1.bf16.msra.mxu0 %v2518_v14  ;;  %1094 = vmatpush1.bf16.msra.mxu1 %v2518_v14 }
 0x194   :  { %1029 = vmatprep.subr.bf16.mxu0 %v2525_v17  ;;  %1095 = vmatprep.subr.bf16.mxu1 %v2525_v17 }
 0x197   :  { %1030 = vmatpush1.bf16.msra.mxu0 %v2532_v18  ;;  %1096 = vmatpush1.bf16.msra.mxu1 %v2532_v18 }
 0x198   :  { %1031 = vmatprep.subr.bf16.mxu0 %v2539_v29  ;;  %1097 = vmatprep.subr.bf16.mxu1 %v2539_v29 }
 0x19b   :  { %1032 = vmatpush1.bf16.msra.mxu0 %v2546_v31  ;;  %1098 = vmatpush1.bf16.msra.mxu1 %v2546_v31 }
 0x19c   :  { %1033 = vmatprep.subr.bf16.mxu0 %v2553_v34  ;;  %1099 = vmatprep.subr.bf16.mxu1 %v2553_v34 }
 0x19f   :  { %1034 = vmatpush1.bf16.msra.mxu0 %v2560_v37  ;;  %1100 = vmatpush1.bf16.msra.mxu1 %v2560_v37 }
 0x1a0   :  { %1035 = vmatprep.subr.bf16.mxu0 %v2567_v43  ;;  %1101 = vmatprep.subr.bf16.mxu1 %v2567_v43 }
 0x1a3   :  { %1036 = vmatpush2.bf16.msra.mxu0 %v2574_v44  ;;  %1102 = vmatpush2.bf16.msra.mxu1 %v2574_v44 }
 0x1a4   :  { %1037 = vmatprep.subr.bf16.mxu0 %v2581_v46  ;;  %1103 = vmatprep.subr.bf16.mxu1 %v2581_v46 }
 0x1a7   :  { %1038 = vmatpush2.bf16.msra.mxu0 %v2588_v47  ;;  %1104 = vmatpush2.bf16.msra.mxu1 %v2588_v47 }
 0x1a8   :  { %1039 = vmatprep.subr.bf16.mxu0 %v2595_v49  ;;  %1105 = vmatprep.subr.bf16.mxu1 %v2595_v49 }
 0x1ab   :  { %1040 = vmatpush2.bf16.msra.mxu0 %v2602_v50  ;;  %1106 = vmatpush2.bf16.msra.mxu1 %v2602_v50 }
 0x1ac   :  { %1041 = vmatprep.subr.bf16.mxu0 %v2609_v51  ;;  %1107 = vmatprep.subr.bf16.mxu1 %v2609_v51 }
 0x1af   :  { %1042 = vmatpush2.bf16.msra.mxu0 %v2616_v0  ;;  %1108 = vmatpush2.bf16.msra.mxu1 %v2616_v0 }
 0x1b0   :  { %1043 = vmatprep.subr.bf16.mxu0 %v2623_v52  ;;  %1109 = vmatprep.subr.bf16.mxu1 %v2623_v52 }
 0x1b3   :  { %1044 = vmatpush2.bf16.msra.mxu0 %v2630_v53  ;;  %1110 = vmatpush2.bf16.msra.mxu1 %v2630_v53 }
 0x1b4   :  { %1045 = vmatprep.subr.bf16.mxu0 %v2637_v54  ;;  %1111 = vmatprep.subr.bf16.mxu1 %v2637_v54 }
 0x1b7   :  { %1046 = vmatpush2.bf16.msra.mxu0 %v2644_v55  ;;  %1112 = vmatpush2.bf16.msra.mxu1 %v2644_v55 }
 0x1b8   :  { %1047 = vmatprep.subr.bf16.mxu0 %v2651_v56  ;;  %1113 = vmatprep.subr.bf16.mxu1 %v2651_v56 }
 0x1bb   :  { %1048 = vmatpush2.bf16.msra.mxu0 %v2658_v57  ;;  %1114 = vmatpush2.bf16.msra.mxu1 %v2658_v57 }
 0x1bc   :  { %1049 = vmatprep.subr.bf16.mxu0 %v2669_v1  ;;  %1115 = vmatprep.subr.bf16.mxu1 %v2669_v1 }
 0x1bf   :  { %1050 = vmatpush2.bf16.msra.mxu0 %v2685_v60  ;;  %1116 = vmatpush2.bf16.msra.mxu1 %v2685_v60 }
 0x1c0   :  { %1151 = vmatprep.subr.bf16.mxu0 %v2435_v8  ;;  %1217 = vmatprep.subr.bf16.mxu1 %v2435_v8 }
 0x1c2   :  { %v657_v9 = vpop.f32.mrf.mxu0  ;;  %v723_v10 = vpop.f32.mrf.mxu1  ;;  %1580 = vmatmul.mubr.msk.bf16.vlgmr.msra.gmra.mxu0 %vm2677_vm6, %v1745_v24  ;;  %1587 = vmatmul.mubr.msk.bf16.vlgmr.msra.gmra.mxu1 %vm1586_vm8, %v1745_v24 }
 0x1c3   :  { %v677_v21 = vmul.f32 %v670_v3, %v657_v9  ;;  %v743_v11 = vmul.f32 %v736_v4, %v723_v10  ;;  %1152 = vmatpush1.bf16.msra.mxu0 %v2452_v20  ;;  %1218 = vmatpush1.bf16.msra.mxu1 %v2452_v20 }
 0x1c4   :  { %v659_v8 = vpop.f32.mrf.mxu0  ;;  %v725_v12 = vpop.f32.mrf.mxu1  ;;  %1153 = vmatprep.subr.bf16.mxu0 %v2459_v25  ;;  %1219 = vmatprep.subr.bf16.mxu1 %v2459_v25 }
 0x1c5   :  { %v679_v15 = vadd.f32 %v677_v21, %v2468_v33  ;;  %v678_v16 = vmul.f32 %v674_v5, %v659_v8  ;;  %v744_v19 = vmul.f32 %v740_v6, %v725_v12  ;;  %1592 = vmatprep.mubr.msk.bf16.mxu0 %vm2696_vm10, %v1745_v24  ;;  %1599 = vmatprep.mubr.msk.bf16.mxu1 %vm1598_vm11, %v1745_v24  ;;  %v1708_v5 = vld [vmem:[%s2876_s3 + $0x10] sm:$0xff]   ;;  %v1709_v12 = vld [vmem:[%s2876_s3 + $0x48] sm:$0xff]  }
 0x1c6   :  { %v661_v22 = vpop.f32.mrf.mxu0  ;;  %v727_v23 = vpop.f32.mrf.mxu1  ;;  %v802_v33 = vrot.slane %v1553_v30, %v2222_v45 }
 0x1c7   :  { %v2713_v26 = vadd.f32 %v743_v11, %v679_v15  ;;  %v680_v20 = vadd.f32 %v678_v16, %v2485_v42  ;;  %1154 = vmatpush1.bf16.msra.mxu0 %v2474_v36  ;;  %1220 = vmatpush1.bf16.msra.mxu1 %v2474_v36  ;;  %v806_v36 = vrot.slane %v1553_v30, %v2234_v48 }
 0x1c8   :  { %v662_v25 = vpop.f32.mrf.mxu0  ;;  %v728_v27 = vpop.f32.mrf.mxu1  ;;  %1155 = vmatprep.subr.bf16.mxu0 %v2481_v41  ;;  %1221 = vmatprep.subr.bf16.mxu1 %v2481_v41 }
 0x1c9   :  { %v2720_v28 = vadd.f32 %v744_v19, %v680_v20  ;;  %v1710_v19 = vld [vmem:[%s2876_s3 + $0x8] sm:$0xff]   ;;  %v1711_v20 = vld [vmem:[%s2876_s3 + $0x40] sm:$0xff]   ;;  %v1581_v27 = vld [vmem:[%s2875_s2 + $0x14] ss:$8 sm:$0x3] }
 0x1ca   :  { %v1712_v25 = vld [vmem:[%s2876_s3] sm:$0xff]   ;;  %v1066_v30 = vrot.slane %v1581_v27, %v2222_v45 }
 0x1cb   :  { %1156 = vmatpush1.bf16.msra.mxu0 %v2490_v61  ;;  %1222 = vmatpush1.bf16.msra.mxu1 %v2490_v61 }
 0x1cc   :  { %1157 = vmatprep.subr.bf16.mxu0 %v2497_v62  ;;  %1223 = vmatprep.subr.bf16.mxu1 %v2497_v62 }
 0x1cf   :  { %1158 = vmatpush1.bf16.msra.mxu0 %v2504_v63  ;;  %1224 = vmatpush1.bf16.msra.mxu1 %v2504_v63 }
 0x1d0   :  { %1159 = vmatprep.subr.bf16.mxu0 %v2511_v13  ;;  %1225 = vmatprep.subr.bf16.mxu1 %v2511_v13 }
 0x1d3   :  { %1160 = vmatpush1.bf16.msra.mxu0 %v2518_v14  ;;  %1226 = vmatpush1.bf16.msra.mxu1 %v2518_v14 }
 0x1d4   :  { %1161 = vmatprep.subr.bf16.mxu0 %v2525_v17  ;;  %1227 = vmatprep.subr.bf16.mxu1 %v2525_v17 }
 0x1d7   :  { %1162 = vmatpush1.bf16.msra.mxu0 %v2532_v18  ;;  %1228 = vmatpush1.bf16.msra.mxu1 %v2532_v18 }
 0x1d8   :  { %1163 = vmatprep.subr.bf16.mxu0 %v2539_v29  ;;  %1229 = vmatprep.subr.bf16.mxu1 %v2539_v29 }
 0x1db   :  { %1164 = vmatpush1.bf16.msra.mxu0 %v2546_v31  ;;  %1230 = vmatpush1.bf16.msra.mxu1 %v2546_v31 }
 0x1dc   :  { %1165 = vmatprep.subr.bf16.mxu0 %v2553_v34  ;;  %1231 = vmatprep.subr.bf16.mxu1 %v2553_v34 }
 0x1df   :  { %1166 = vmatpush1.bf16.msra.mxu0 %v2560_v37  ;;  %1232 = vmatpush1.bf16.msra.mxu1 %v2560_v37 }
 0x1e0   :  { %1167 = vmatprep.subr.bf16.mxu0 %v2567_v43  ;;  %1233 = vmatprep.subr.bf16.mxu1 %v2567_v43 }
 0x1e3   :  { %1168 = vmatpush2.bf16.msra.mxu0 %v2574_v44  ;;  %1234 = vmatpush2.bf16.msra.mxu1 %v2574_v44  ;;  %v1698_v44 = vld [vmem:[%s2876_s3 + $0x38] sm:$0xff]  }
 0x1e4   :  { %1169 = vmatprep.subr.bf16.mxu0 %v2581_v46  ;;  %1235 = vmatprep.subr.bf16.mxu1 %v2581_v46  ;;  %v1699_v46 = vld [vmem:[%s2876_s3 + $0x70] sm:$0xff]  }
 0x1e7   :  { %1170 = vmatpush2.bf16.msra.mxu0 %v2588_v47  ;;  %1236 = vmatpush2.bf16.msra.mxu1 %v2588_v47  ;;  %v1700_v47 = vld [vmem:[%s2876_s3 + $0x30] sm:$0xff]  }
 0x1e8   :  { %1171 = vmatprep.subr.bf16.mxu0 %v2595_v49  ;;  %1237 = vmatprep.subr.bf16.mxu1 %v2595_v49  ;;  %v1701_v49 = vld [vmem:[%s2876_s3 + $0x68] sm:$0xff]  }
 0x1eb   :  { %1172 = vmatpush2.bf16.msra.mxu0 %v2602_v50  ;;  %1238 = vmatpush2.bf16.msra.mxu1 %v2602_v50  ;;  %v1702_v50 = vld [vmem:[%s2876_s3 + $0x28] sm:$0xff]  }
 0x1ec   :  { %1173 = vmatprep.subr.bf16.mxu0 %v2609_v51  ;;  %1239 = vmatprep.subr.bf16.mxu1 %v2609_v51  ;;  %v1703_v51 = vld [vmem:[%s2876_s3 + $0x60] sm:$0xff]  }
 0x1ef   :  { %1174 = vmatpush2.bf16.msra.mxu0 %v2616_v0  ;;  %1240 = vmatpush2.bf16.msra.mxu1 %v2616_v0  ;;  %v1704_v0 = vld [vmem:[%s2876_s3 + $0x20] sm:$0xff]  }
 0x1f0   :  { %1175 = vmatprep.subr.bf16.mxu0 %v2623_v52  ;;  %1241 = vmatprep.subr.bf16.mxu1 %v2623_v52  ;;  %v1705_v52 = vld [vmem:[%s2876_s3 + $0x58] sm:$0xff]  }
 0x1f3   :  { %1176 = vmatpush2.bf16.msra.mxu0 %v2630_v53  ;;  %1242 = vmatpush2.bf16.msra.mxu1 %v2630_v53  ;;  %v1706_v53 = vld [vmem:[%s2876_s3 + $0x18] sm:$0xff]  }
 0x1f4   :  { %1177 = vmatprep.subr.bf16.mxu0 %v2637_v54  ;;  %1243 = vmatprep.subr.bf16.mxu1 %v2637_v54  ;;  %v1567_v54 = vld [vmem:[%s2875_s2 + $0x12] ss:$8 sm:$0x3] }
 0x1f5   :  { %v938_v58 = vrot.slane %v1567_v54, %v2234_v48 }
 0x1f7   :  { %1178 = vmatpush2.bf16.msra.mxu0 %v2644_v55  ;;  %1244 = vmatpush2.bf16.msra.mxu1 %v2644_v55  ;;  %v1574_v55 = vld [vmem:[%s2875_s2 + $0x13] ss:$8 sm:$0x3] }
 0x1f8   :  { %1179 = vmatprep.subr.bf16.mxu0 %v2651_v56  ;;  %1245 = vmatprep.subr.bf16.mxu1 %v2651_v56  ;;  %v934_v56 = vrot.slane %v1567_v54, %v2222_v45 }
 0x1fb   :  { %1180 = vmatpush2.bf16.msra.mxu0 %v2658_v57  ;;  %1246 = vmatpush2.bf16.msra.mxu1 %v2658_v57  ;;  %v1000_v57 = vrot.slane %v1574_v55, %v2222_v45 }
 0x1fc   :  { %1181 = vmatprep.subr.bf16.mxu0 %v2669_v1  ;;  %1247 = vmatprep.subr.bf16.mxu1 %v2669_v1  ;;  %v1004_v1 = vrot.slane %v1574_v55, %v2234_v48 }
 0x1ff   :  { %1182 = vmatpush2.bf16.msra.mxu0 %v2685_v60  ;;  %1248 = vmatpush2.bf16.msra.mxu1 %v2685_v60  ;;  %v1707_v60 = vld [vmem:[%s2876_s3 + $0x50] sm:$0xff]  }
 0x202   :  { %v789_v39 = vpop.f32.mrf.mxu0  ;;  %v855_v41 = vpop.f32.mrf.mxu1  ;;  %1594 = vmatmul.mubr.msk.bf16.vlgmr.msra.gmra.mxu0 %vm1593_vm14, %v1745_v24  ;;  %1601 = vmatmul.mubr.msk.bf16.vlgmr.msra.gmra.mxu1 %vm1600_vm15, %v1745_v24  ;;  %v1697_v24 = vld [vmem:[%s2876_s3 + $0x78] sm:$0xff]  }
 0x203   :  { %v809_v40 = vmul.f32 %v802_v33, %v789_v39  ;;  %v875_v42 = vmul.f32 %v868_v35, %v855_v41  ;;  %1619 = vmatprep.subr.bf16.mxu0 %v1697_v24 }
 0x204   :  { %v791_v61 = vpop.f32.mrf.mxu0  ;;  %v857_v62 = vpop.f32.mrf.mxu1  ;;  %1620 = vmatpush3.bf16.msra.mxu0 %v1698_v44 }
 0x205   :  { %v811_v63 = vadd.f32 %v809_v40, %v2713_v26  ;;  %v810_v13 = vmul.f32 %v806_v36, %v791_v61  ;;  %v876_v14 = vmul.f32 %v872_v38, %v857_v62  ;;  %1621 = vmatprep.subr.bf16.mxu0 %v1699_v46 }
 0x206   :  { %v793_v17 = vpop.f32.mrf.mxu0  ;;  %v859_v18 = vpop.f32.mrf.mxu1 }
 0x207   :  { %v877_v29 = vadd.f32 %v875_v42, %v811_v63  ;;  %v812_v31 = vadd.f32 %v810_v13, %v2720_v28  ;;  %v1588_v28 = vld [vmem:[%s2875_s2 + $0x15] ss:$8 sm:$0x3]  ;;  %v1595_v17 = vld [vmem:[%s2875_s2 + $0x16] ss:$8 sm:$0x3] }
 0x208   :  { %v794_v34 = vpop.f32.mrf.mxu0  ;;  %v860_v37 = vpop.f32.mrf.mxu1  ;;  %1622 = vmatpush3.bf16.msra.mxu0 %v1700_v47  ;;  %v1132_v32 = vrot.slane %v1588_v28, %v2222_v45  ;;  %v1602_v18 = vld [vmem:[%s2875_s2 + $0x17] ss:$8 sm:$0x3]  ;;  %v1202_v44 = vrot.slane %v1595_v17, %v2234_v48 }
 0x209   :  { %v878_v43 = vadd.f32 %v876_v14, %v812_v31  ;;  %1623 = vmatprep.subr.bf16.mxu0 %v1701_v49  ;;  %v1070_v14 = vrot.slane %v1581_v27, %v2234_v48  ;;  %v1136_v31 = vrot.slane %v1588_v28, %v2234_v48  ;;  %v1198_v34 = vrot.slane %v1595_v17, %v2222_v45 }
 0x20a   :  { %v1264_v37 = vrot.slane %v1602_v18, %v2222_v45 }
 0x20c   :  { %1624 = vmatpush3.bf16.msra.mxu0 %v1702_v50 }
 0x20d   :  { %1625 = vmatprep.subr.bf16.mxu0 %v1703_v51  ;;  %v1268_v51 = vrot.slane %v1602_v18, %v2234_v48 }
 0x210   :  { %1626 = vmatpush3.bf16.msra.mxu0 %v1704_v0 }
 0x211   :  { %1627 = vmatprep.subr.bf16.mxu0 %v1705_v52 }
 0x214   :  { %1628 = vmatpush3.bf16.msra.mxu0 %v1706_v53 }
 0x215   :  { %1629 = vmatprep.subr.bf16.mxu0 %v1707_v60 }
 0x218   :  { %1630 = vmatpush3.bf16.msra.mxu0 %v1708_v5 }
 0x219   :  { %1631 = vmatprep.subr.bf16.mxu0 %v1709_v12 }
 0x21c   :  { %1632 = vmatpush3.bf16.msra.mxu0 %v1710_v19 }
 0x21d   :  { %1633 = vmatprep.subr.bf16.mxu0 %v1711_v20 }
 0x220   :  { %1634 = vmatpush3.bf16.msra.mxu0 %v1712_v25 }
 0x242   :  { %v921_v2 = vpop.f32.mrf.mxu0  ;;  %v987_v59 = vpop.f32.mrf.mxu1 }
 0x243   :  { %v941_v3 = vmul.f32 %v934_v56, %v921_v2  ;;  %v1007_v4 = vmul.f32 %v1000_v57, %v987_v59 }
 0x244   :  { %v923_v6 = vpop.f32.mrf.mxu0  ;;  %v989_v7 = vpop.f32.mrf.mxu1 }
 0x245   :  { %v943_v9 = vadd.f32 %v941_v3, %v877_v29  ;;  %v942_v10 = vmul.f32 %v938_v58, %v923_v6  ;;  %v1008_v21 = vmul.f32 %v1004_v1, %v989_v7  ;;  %v1746_v3 = vmov -1.0  }
 0x246   :  { %v925_v11 = vpop.f32.mrf.mxu0  ;;  %v991_v8 = vpop.f32.mrf.mxu1 }
 0x247   :  { %v1009_v15 = vadd.f32 %v1007_v4, %v943_v9  ;;  %v944_v16 = vadd.f32 %v942_v10, %v878_v43 }
 0x248   :  { %v926_v22 = vpop.f32.mrf.mxu0  ;;  %v992_v23 = vpop.f32.mrf.mxu1 }
 0x249   :  { %v1010_v26 = vadd.f32 %v1008_v21, %v944_v16 }
 0x282   :  { %v1053_v33 = vpop.f32.mrf.mxu0  ;;  %v1119_v35 = vpop.f32.mrf.mxu1 }
 0x283   :  { %v1073_v36 = vmul.f32 %v1066_v30, %v1053_v33  ;;  %v1139_v38 = vmul.f32 %v1132_v32, %v1119_v35 }
 0x284   :  { %v1055_v39 = vpop.f32.mrf.mxu0  ;;  %v1121_v41 = vpop.f32.mrf.mxu1 }
 0x285   :  { %v1075_v40 = vadd.f32 %v1073_v36, %v1009_v15  ;;  %v1074_v29 = vmul.f32 %v1070_v14, %v1055_v39  ;;  %v1140_v24 = vmul.f32 %v1136_v31, %v1121_v41 }
 0x286   :  { %v1057_v42 = vpop.f32.mrf.mxu0  ;;  %v1123_v61 = vpop.f32.mrf.mxu1 }
 0x287   :  { %v1141_v62 = vadd.f32 %v1139_v38, %v1075_v40  ;;  %v1076_v43 = vadd.f32 %v1074_v29, %v1010_v26 }
 0x288   :  { %v1058_v63 = vpop.f32.mrf.mxu0  ;;  %v1124_v13 = vpop.f32.mrf.mxu1 }
 0x289   :  { %v1142_v53 = vadd.f32 %v1140_v24, %v1076_v43 }
 0x2c2   :  { %v1185_v46 = vpop.f32.mrf.mxu0  ;;  %v1251_v47 = vpop.f32.mrf.mxu1 }
 0x2c3   :  { %v1205_v49 = vmul.f32 %v1198_v34, %v1185_v46  ;;  %v1271_v50 = vmul.f32 %v1264_v37, %v1251_v47 }
 0x2c4   :  { %v1187_v0 = vpop.f32.mrf.mxu0  ;;  %v1253_v52 = vpop.f32.mrf.mxu1 }
 0x2c5   :  { %v1207_v54 = vadd.f32 %v1205_v49, %v1141_v62  ;;  %v1206_v55 = vmul.f32 %v1202_v44, %v1187_v0  ;;  %v1272_v45 = vmul.f32 %v1268_v51, %v1253_v52 }
 0x2c6   :  { %v1189_v56 = vpop.f32.mrf.mxu0  ;;  %v1255_v57 = vpop.f32.mrf.mxu1 }
 0x2c7   :  { %v1273_v58 = vadd.f32 %v1271_v50, %v1207_v54  ;;  %v1208_v1 = vadd.f32 %v1206_v55, %v1142_v53 }
 0x2c8   :  { %v1190_v2 = vpop.f32.mrf.mxu0  ;;  %v1256_v59 = vpop.f32.mrf.mxu1 }
 0x2c9   :  { %vm1275_vm0 = vcmp.gt.f32.partialorder %v1273_v58, 0.0  ;;  %v1274_v60 = vadd.f32 %v1272_v45, %v1208_v1 }
 0x2ca   :  { %v1277_v4 = vsel %vm1275_vm0, 1.0, %v1746_v3 }
 0x2cb   :  { %vm1276_vm1 = vcmp.gt.f32.partialorder %v1274_v60, 0.0  ;;  %v1279_v48 = vpack.c.bf16 %v1277_v4, %v1277_v4 }
 0x2cc   :  { %v1278_v5 = vsel %vm1276_vm1, 1.0, %v1746_v3 }
 0x2cd   :  { %v1280_v6 = vpack.c.bf16 %v1278_v5, %v1278_v5 }
 0x2cf   :  { %1441 = vmatprep.mubr.bf16.mxu0 %v1280_v6 }
 0x2d0   :  { %1442 = vmatmul.mubr.bf16.vlgmr.msra.gmra.mxu0 %v1279_v48 }
 0x390   :  { %v1635_v7 = vpop.f32.mrf.mxu0 }
 0x392   :  { %v1636_v9 = vpop.f32.mrf.mxu0 }
 0x393   :  { %v1637_v10 = vadd.f32 %v1636_v9, %v1635_v7 }
 0x394   :  { %v1638_v21 = vpop.f32.mrf.mxu0 }
 0x395   :  { %1449 = vst [vmem:[%s2877_s4] sm:$0xff] %v1637_v10 }
 0x396   :  { %v1639_v11 = vpop.f32.mrf.mxu0 }

</bundles_post_ra>
